<compile_context>
chip_gen: v7x
topology: tpu7x:2x2x1
jax: 0.10.0
libtpu: 0.0.40
codegen_flags: <defaults>
</compile_context>

<pallas_src>
import functools

import jax
import jax.numpy as jnp
from jax.experimental import pallas as pl
from jax.experimental.pallas import tpu as pltpu


# ----------------------------- small helpers --------------------------------

def _round_up(x, m):
    return (x + m - 1) // m * m


def _leaky_relu(x, negative_slope=0.2):
    return jnp.where(x > 0, x, negative_slope * x)


def _batch_norm_train(x, eps=1e-5):
    # nn.BatchNorm1d in (default) training mode with default affine init
    # (weight=1, bias=0): normalize with *biased* batch statistics.
    # Fused single pass: sum and sum-of-squares together.
    inv_n = 1.0 / x.shape[0]
    mean = jnp.sum(x, axis=0, keepdims=True) * inv_n
    ex2 = jnp.sum(x * x, axis=0, keepdims=True) * inv_n
    var = jnp.maximum(ex2 - mean * mean, 0.0)
    return (x - mean) * jax.lax.rsqrt(var + eps)


# ------------------------------- kernel --------------------------------------

def _generator_kernel(x_ref, lab_ref, w1a, w1e, w2, w3, w4, w5, w6, b6_ref,
                      o_ref):
    f32 = jnp.float32
    bf16 = jnp.bfloat16
    n = x_ref.shape[0]
    nc_pad = w1e.shape[0]          # one-hot width (padded to 128 lanes)

    # ---- Layer 1: Linear(64+nc -> 128) with embedding + concat + b1 folded --
    # one_hot(labels) @ (E @ W1b + b1)  ==  embedding_lookup @ W1b + b1
    lane = jax.lax.broadcasted_iota(jnp.int32, (n, nc_pad), 1)
    one_hot = jnp.where(lab_ref[...] == lane, 1.0, 0.0).astype(bf16)
    h = jnp.dot(x_ref[...].astype(bf16), w1a[...], preferred_element_type=f32)
    h = h + jnp.dot(one_hot, w1e[...], preferred_element_type=f32)
    h = _leaky_relu(h)

    # ---- Layers 2..5: Linear (bias cancelled by BN) + BatchNorm + LeakyReLU -
    for w in (w2, w3, w4, w5):
        h = jnp.dot(h.astype(bf16), w[...], preferred_element_type=f32)
        h = _leaky_relu(_batch_norm_train(h))

    # ---- Layer 6: Linear(256 -> channels*input_size) + b6 + Tanh ------------
    h = jnp.dot(h.astype(bf16), w6[...], preferred_element_type=f32)
    o_ref[...] = jnp.tanh(h + b6_ref[...])


# ------------------------------ wrapper ---------------------------------------

def _vmem_spec():
    # whole-array block (single grid step) resident in VMEM
    return pl.BlockSpec(memory_space=pltpu.MemorySpace.VMEM)


def prepare_generator_params(params):
    """One-time prep: bf16 weights + algebraic folds (embedding, b1, b2..b5)."""
    bf16 = jnp.bfloat16
    emb = params["embedding"]                    # (nc, nc) f32
    nc = emb.shape[0]
    w1 = params["w1"]                            # (64+nc, 128) f32

    # Split W1 into the noise part and the condition part; fold embedding + b1
    # through the condition part (exact, done in f32).
    w1a = w1[:64]                                # (64, 128)
    emb_w1 = emb @ w1[64:64 + nc] + params["b1"][None, :]   # (nc, 128) f32

    # Pad the class axis to 128 lanes so the in-kernel one-hot matmul is
    # lane-dense; rows >= nc are never selected (labels < nc).
    nc_pad = max(128, _round_up(nc, 128))
    emb_w1_pad = jnp.zeros((nc_pad, 128), jnp.float32).at[:nc].set(emb_w1)

    prepared = {
        "w1a": w1a.astype(bf16),
        "w1e": emb_w1_pad.astype(bf16),
        # b2..b5 are dropped: training-mode BN cancels pre-BN constants.
        "w2": params["w2"].astype(bf16),
        "w3": params["w3"].astype(bf16),
        "w4": params["w4"].astype(bf16),
        "w5": params["w5"].astype(bf16),
        "w6": params["w6"].astype(bf16),
        "b6": params["b6"][None, :].astype(jnp.float32),     # (1, out_dim)
    }
    return prepared


@functools.partial(jax.jit, static_argnames=("channels", "input_size"))
def generator_forward(inputs, labels, prepared, *, channels, input_size):
    """inputs: (N, 64) f32, labels: (N,) int -> (N, channels, input_size) f32."""
    n = inputs.shape[0]
    out_dim = channels * input_size
    labels2d = labels.reshape(n, 1).astype(jnp.int32)

    flat_args = [
        inputs.astype(jnp.float32), labels2d,
        prepared["w1a"], prepared["w1e"],
        prepared["w2"], prepared["w3"], prepared["w4"], prepared["w5"],
        prepared["w6"], prepared["b6"],
    ]

    out = pl.pallas_call(
        _generator_kernel,
        out_shape=jax.ShapeDtypeStruct((n, out_dim), jnp.float32),
        in_specs=[_vmem_spec() for _ in flat_args],
        out_specs=_vmem_spec(),
    )(*flat_args)

    return out.reshape(n, channels, input_size)


# --------------------------- deterministic init -------------------------------

def init_generator_params(key, *, input_size, channels, num_classes):
    """Shapes follow Generator.__init__; kaiming_normal_ * 0.1, bias=0."""
    dims = [64 + num_classes, 128, 256, 256, 512, 256, channels * input_size]
    keys = jax.random.split(key, len(dims))  # 7 keys: 6 linears + embedding
    params = {}
    for i in range(6):
        fan_in, fan_out = dims[i], dims[i + 1]
        std = 0.1 * (2.0 / fan_in) ** 0.5  # kaiming_normal_ (gain=sqrt(2)) * 0.1
        params[f"w{i + 1}"] = (
            std * jax.random.normal(keys[i], (fan_in, fan_out), jnp.float32))
        params[f"b{i + 1}"] = jnp.zeros((fan_out,), jnp.float32)
    # nn.Embedding default init: N(0, 1)
    params["embedding"] = jax.random.normal(
        keys[6], (num_classes, num_classes), jnp.float32)
    return params


# ------------------------- pure-JAX reference (f32) ---------------------------

def generator_reference(inputs, labels, params, *, channels, input_size):
    condition = jnp.take(params["embedding"], labels, axis=0)
    h = jnp.concatenate([inputs, condition], axis=-1).astype(jnp.float32)
    h = _leaky_relu(h @ params["w1"] + params["b1"])
    for i in range(2, 6):
        h = _leaky_relu(_batch_norm_train(h @ params[f"w{i}"] + params[f"b{i}"]))
    h = jnp.tanh(h @ params["w6"] + params["b6"])
    return h.reshape(h.shape[0], channels, input_size)


# --------------------------------- main ---------------------------------------

if __name__ == "__main__":
    input_size = 64     # small but consistent with the module's parameterization
    channels = 1
    num_classes = 10
    batch = 8           # BatchNorm1d (training mode) needs batch > 1

    root = jax.random.PRNGKey(0)
    k_params, k_noise, k_labels = jax.random.split(root, 3)

    params = init_generator_params(
        k_params, input_size=input_size, channels=channels,
        num_classes=num_classes)
    prepared = prepare_generator_params(params)

    inputs = jax.random.normal(k_noise, (batch, 64), jnp.float32)
    labels = jax.random.randint(k_labels, (batch,), 0, num_classes, jnp.int32)

    out = generator_forward(inputs, labels, prepared,
                            channels=channels, input_size=input_size)
    out = jax.block_until_ready(out)

    assert out.shape == (batch, channels, input_size), out.shape
    assert bool(jnp.all(jnp.isfinite(out)))

    # bf16-matmul kernel vs f32 reference: loose tolerance.
    ref = jax.block_until_ready(
        generator_reference(inputs, labels, params,
                            channels=channels, input_size=input_size))
    max_err = float(jnp.max(jnp.abs(out - ref)))
    assert max_err < 1e-1, f"max_err={max_err}"

    print("KERNEL_OK")
</pallas_src>

<mosaic_0001>
module attributes {stable_mosaic.version = 11 : i64} {
  func.func @_generator_kernel(%arg0: memref<8x64xf32, #tpu.memory_space<vmem>>, %arg1: memref<8x1xi32, #tpu.memory_space<vmem>>, %arg2: memref<64x128xbf16, #tpu.memory_space<vmem>>, %arg3: memref<128x128xbf16, #tpu.memory_space<vmem>>, %arg4: memref<128x256xbf16, #tpu.memory_space<vmem>>, %arg5: memref<256x256xbf16, #tpu.memory_space<vmem>>, %arg6: memref<256x512xbf16, #tpu.memory_space<vmem>>, %arg7: memref<512x256xbf16, #tpu.memory_space<vmem>>, %arg8: memref<256x64xbf16, #tpu.memory_space<vmem>>, %arg9: memref<1x64xf32, #tpu.memory_space<vmem>>, %arg10: memref<8x64xf32, #tpu.memory_space<vmem>>) attributes {dimension_semantics = [], scalar_prefetch = 0 : i64, scratch_operands = 0 : i64, tpu.core_type = #tpu.core_type<tc>} {
    %0 = tpu.iota {dimensions = array<i32: 1>} : vector<8x128xi32>
    %c0 = arith.constant 0 : index
    %c0_0 = arith.constant 0 : index
    %1 = vector.load %arg1[%c0, %c0_0] : memref<8x1xi32, #tpu.memory_space<vmem>>, vector<8x1xi32>
    %2 = vector.broadcast %1 : vector<8x1xi32> to vector<8x128xi32>
    %3 = arith.cmpi eq, %2, %0 : vector<8x128xi32>
    %cst = arith.constant 1.000000e+00 : f32
    %cst_1 = arith.constant 0.000000e+00 : f32
    %4 = vector.broadcast %cst : f32 to vector<8x128xf32>
    %5 = vector.broadcast %cst_1 : f32 to vector<8x128xf32>
    %6 = arith.select %3, %4, %5 : vector<8x128xi1>, vector<8x128xf32>
    %7 = arith.truncf %6 : vector<8x128xf32> to vector<8x128xbf16>
    %c0_2 = arith.constant 0 : index
    %c0_3 = arith.constant 0 : index
    %8 = vector.load %arg0[%c0_2, %c0_3] : memref<8x64xf32, #tpu.memory_space<vmem>>, vector<8x64xf32>
    %9 = arith.truncf %8 : vector<8x64xf32> to vector<8x64xbf16>
    %c0_4 = arith.constant 0 : index
    %c0_5 = arith.constant 0 : index
    %10 = vector.load %arg2[%c0_4, %c0_5] : memref<64x128xbf16, #tpu.memory_space<vmem>>, vector<64x128xbf16>
    %cst_6 = arith.constant dense<0.000000e+00> : vector<8x128xf32>
    %11 = tpu.matmul %9, %10, %cst_6 {dimension_numbers = #tpu.dot_dimension_numbers<[1], [0], [0], [1], [0, 0, 1, 1], [], []>} : vector<8x64xbf16>, vector<64x128xbf16>, vector<8x128xf32> -> vector<8x128xf32>
    %c0_7 = arith.constant 0 : index
    %c0_8 = arith.constant 0 : index
    %12 = vector.load %arg3[%c0_7, %c0_8] : memref<128x128xbf16, #tpu.memory_space<vmem>>, vector<128x128xbf16>
    %cst_9 = arith.constant dense<0.000000e+00> : vector<8x128xf32>
    %13 = tpu.matmul %7, %12, %cst_9 {dimension_numbers = #tpu.dot_dimension_numbers<[1], [0], [0], [1], [0, 0, 1, 1], [], []>} : vector<8x128xbf16>, vector<128x128xbf16>, vector<8x128xf32> -> vector<8x128xf32>
    %14 = arith.addf %11, %13 : vector<8x128xf32>
    %cst_10 = arith.constant 0.000000e+00 : f32
    %15 = vector.broadcast %cst_10 : f32 to vector<8x128xf32>
    %16 = arith.cmpf ogt, %14, %15 : vector<8x128xf32>
    %cst_11 = arith.constant 2.000000e-01 : f32
    %17 = vector.broadcast %cst_11 : f32 to vector<8x128xf32>
    %18 = arith.mulf %17, %14 : vector<8x128xf32>
    %19 = arith.select %16, %14, %18 : vector<8x128xi1>, vector<8x128xf32>
    %20 = arith.truncf %19 : vector<8x128xf32> to vector<8x128xbf16>
    %c0_12 = arith.constant 0 : index
    %c0_13 = arith.constant 0 : index
    %21 = vector.load %arg4[%c0_12, %c0_13] : memref<128x256xbf16, #tpu.memory_space<vmem>>, vector<128x256xbf16>
    %cst_14 = arith.constant dense<0.000000e+00> : vector<8x256xf32>
    %22 = tpu.matmul %20, %21, %cst_14 {dimension_numbers = #tpu.dot_dimension_numbers<[1], [0], [0], [1], [0, 0, 1, 1], [], []>} : vector<8x128xbf16>, vector<128x256xbf16>, vector<8x256xf32> -> vector<8x256xf32>
    %cst_15 = arith.constant dense<0.000000e+00> : vector<256xf32>
    %23 = vector.multi_reduction <add>, %22, %cst_15 [0] : vector<8x256xf32> to vector<256xf32>
    %24 = vector.shape_cast %23 : vector<256xf32> to vector<1x256xf32>
    %cst_16 = arith.constant 1.250000e-01 : f32
    %25 = vector.broadcast %cst_16 : f32 to vector<1x256xf32>
    %26 = arith.mulf %24, %25 : vector<1x256xf32>
    %27 = arith.mulf %22, %22 : vector<8x256xf32>
    %cst_17 = arith.constant dense<0.000000e+00> : vector<256xf32>
    %28 = vector.multi_reduction <add>, %27, %cst_17 [0] : vector<8x256xf32> to vector<256xf32>
    %29 = vector.shape_cast %28 : vector<256xf32> to vector<1x256xf32>
    %cst_18 = arith.constant 1.250000e-01 : f32
    %30 = vector.broadcast %cst_18 : f32 to vector<1x256xf32>
    %31 = arith.mulf %29, %30 : vector<1x256xf32>
    %32 = arith.mulf %26, %26 : vector<1x256xf32>
    %33 = arith.subf %31, %32 : vector<1x256xf32>
    %cst_19 = arith.constant 0.000000e+00 : f32
    %34 = vector.broadcast %cst_19 : f32 to vector<1x256xf32>
    %35 = arith.maximumf %33, %34 : vector<1x256xf32>
    %36 = vector.broadcast %26 : vector<1x256xf32> to vector<8x256xf32>
    %37 = arith.subf %22, %36 : vector<8x256xf32>
    %cst_20 = arith.constant 9.99999974E-6 : f32
    %38 = vector.broadcast %cst_20 : f32 to vector<1x256xf32>
    %39 = arith.addf %35, %38 : vector<1x256xf32>
    %40 = math.rsqrt %39 : vector<1x256xf32>
    %41 = vector.broadcast %40 : vector<1x256xf32> to vector<8x256xf32>
    %42 = arith.mulf %37, %41 : vector<8x256xf32>
    %cst_21 = arith.constant 0.000000e+00 : f32
    %43 = vector.broadcast %cst_21 : f32 to vector<8x256xf32>
    %44 = arith.cmpf ogt, %42, %43 : vector<8x256xf32>
    %cst_22 = arith.constant 2.000000e-01 : f32
    %45 = vector.broadcast %cst_22 : f32 to vector<8x256xf32>
    %46 = arith.mulf %45, %42 : vector<8x256xf32>
    %47 = arith.select %44, %42, %46 : vector<8x256xi1>, vector<8x256xf32>
    %48 = arith.truncf %47 : vector<8x256xf32> to vector<8x256xbf16>
    %c0_23 = arith.constant 0 : index
    %c0_24 = arith.constant 0 : index
    %49 = vector.load %arg5[%c0_23, %c0_24] : memref<256x256xbf16, #tpu.memory_space<vmem>>, vector<256x256xbf16>
    %cst_25 = arith.constant dense<0.000000e+00> : vector<8x256xf32>
    %50 = tpu.matmul %48, %49, %cst_25 {dimension_numbers = #tpu.dot_dimension_numbers<[1], [0], [0], [1], [0, 0, 1, 1], [], []>} : vector<8x256xbf16>, vector<256x256xbf16>, vector<8x256xf32> -> vector<8x256xf32>
    %cst_26 = arith.constant dense<0.000000e+00> : vector<256xf32>
    %51 = vector.multi_reduction <add>, %50, %cst_26 [0] : vector<8x256xf32> to vector<256xf32>
    %52 = vector.shape_cast %51 : vector<256xf32> to vector<1x256xf32>
    %cst_27 = arith.constant 1.250000e-01 : f32
    %53 = vector.broadcast %cst_27 : f32 to vector<1x256xf32>
    %54 = arith.mulf %52, %53 : vector<1x256xf32>
    %55 = arith.mulf %50, %50 : vector<8x256xf32>
    %cst_28 = arith.constant dense<0.000000e+00> : vector<256xf32>
    %56 = vector.multi_reduction <add>, %55, %cst_28 [0] : vector<8x256xf32> to vector<256xf32>
    %57 = vector.shape_cast %56 : vector<256xf32> to vector<1x256xf32>
    %cst_29 = arith.constant 1.250000e-01 : f32
    %58 = vector.broadcast %cst_29 : f32 to vector<1x256xf32>
    %59 = arith.mulf %57, %58 : vector<1x256xf32>
    %60 = arith.mulf %54, %54 : vector<1x256xf32>
    %61 = arith.subf %59, %60 : vector<1x256xf32>
    %cst_30 = arith.constant 0.000000e+00 : f32
    %62 = vector.broadcast %cst_30 : f32 to vector<1x256xf32>
    %63 = arith.maximumf %61, %62 : vector<1x256xf32>
    %64 = vector.broadcast %54 : vector<1x256xf32> to vector<8x256xf32>
    %65 = arith.subf %50, %64 : vector<8x256xf32>
    %cst_31 = arith.constant 9.99999974E-6 : f32
    %66 = vector.broadcast %cst_31 : f32 to vector<1x256xf32>
    %67 = arith.addf %63, %66 : vector<1x256xf32>
    %68 = math.rsqrt %67 : vector<1x256xf32>
    %69 = vector.broadcast %68 : vector<1x256xf32> to vector<8x256xf32>
    %70 = arith.mulf %65, %69 : vector<8x256xf32>
    %cst_32 = arith.constant 0.000000e+00 : f32
    %71 = vector.broadcast %cst_32 : f32 to vector<8x256xf32>
    %72 = arith.cmpf ogt, %70, %71 : vector<8x256xf32>
    %cst_33 = arith.constant 2.000000e-01 : f32
    %73 = vector.broadcast %cst_33 : f32 to vector<8x256xf32>
    %74 = arith.mulf %73, %70 : vector<8x256xf32>
    %75 = arith.select %72, %70, %74 : vector<8x256xi1>, vector<8x256xf32>
    %76 = arith.truncf %75 : vector<8x256xf32> to vector<8x256xbf16>
    %c0_34 = arith.constant 0 : index
    %c0_35 = arith.constant 0 : index
    %77 = vector.load %arg6[%c0_34, %c0_35] : memref<256x512xbf16, #tpu.memory_space<vmem>>, vector<256x512xbf16>
    %cst_36 = arith.constant dense<0.000000e+00> : vector<8x512xf32>
    %78 = tpu.matmul %76, %77, %cst_36 {dimension_numbers = #tpu.dot_dimension_numbers<[1], [0], [0], [1], [0, 0, 1, 1], [], []>} : vector<8x256xbf16>, vector<256x512xbf16>, vector<8x512xf32> -> vector<8x512xf32>
    %cst_37 = arith.constant dense<0.000000e+00> : vector<512xf32>
    %79 = vector.multi_reduction <add>, %78, %cst_37 [0] : vector<8x512xf32> to vector<512xf32>
    %80 = vector.shape_cast %79 : vector<512xf32> to vector<1x512xf32>
    %cst_38 = arith.constant 1.250000e-01 : f32
    %81 = vector.broadcast %cst_38 : f32 to vector<1x512xf32>
    %82 = arith.mulf %80, %81 : vector<1x512xf32>
    %83 = arith.mulf %78, %78 : vector<8x512xf32>
    %cst_39 = arith.constant dense<0.000000e+00> : vector<512xf32>
    %84 = vector.multi_reduction <add>, %83, %cst_39 [0] : vector<8x512xf32> to vector<512xf32>
    %85 = vector.shape_cast %84 : vector<512xf32> to vector<1x512xf32>
    %cst_40 = arith.constant 1.250000e-01 : f32
    %86 = vector.broadcast %cst_40 : f32 to vector<1x512xf32>
    %87 = arith.mulf %85, %86 : vector<1x512xf32>
    %88 = arith.mulf %82, %82 : vector<1x512xf32>
    %89 = arith.subf %87, %88 : vector<1x512xf32>
    %cst_41 = arith.constant 0.000000e+00 : f32
    %90 = vector.broadcast %cst_41 : f32 to vector<1x512xf32>
    %91 = arith.maximumf %89, %90 : vector<1x512xf32>
    %92 = vector.broadcast %82 : vector<1x512xf32> to vector<8x512xf32>
    %93 = arith.subf %78, %92 : vector<8x512xf32>
    %cst_42 = arith.constant 9.99999974E-6 : f32
    %94 = vector.broadcast %cst_42 : f32 to vector<1x512xf32>
    %95 = arith.addf %91, %94 : vector<1x512xf32>
    %96 = math.rsqrt %95 : vector<1x512xf32>
    %97 = vector.broadcast %96 : vector<1x512xf32> to vector<8x512xf32>
    %98 = arith.mulf %93, %97 : vector<8x512xf32>
    %cst_43 = arith.constant 0.000000e+00 : f32
    %99 = vector.broadcast %cst_43 : f32 to vector<8x512xf32>
    %100 = arith.cmpf ogt, %98, %99 : vector<8x512xf32>
    %cst_44 = arith.constant 2.000000e-01 : f32
    %101 = vector.broadcast %cst_44 : f32 to vector<8x512xf32>
    %102 = arith.mulf %101, %98 : vector<8x512xf32>
    %103 = arith.select %100, %98, %102 : vector<8x512xi1>, vector<8x512xf32>
    %104 = arith.truncf %103 : vector<8x512xf32> to vector<8x512xbf16>
    %c0_45 = arith.constant 0 : index
    %c0_46 = arith.constant 0 : index
    %105 = vector.load %arg7[%c0_45, %c0_46] : memref<512x256xbf16, #tpu.memory_space<vmem>>, vector<512x256xbf16>
    %cst_47 = arith.constant dense<0.000000e+00> : vector<8x256xf32>
    %106 = tpu.matmul %104, %105, %cst_47 {dimension_numbers = #tpu.dot_dimension_numbers<[1], [0], [0], [1], [0, 0, 1, 1], [], []>} : vector<8x512xbf16>, vector<512x256xbf16>, vector<8x256xf32> -> vector<8x256xf32>
    %cst_48 = arith.constant dense<0.000000e+00> : vector<256xf32>
    %107 = vector.multi_reduction <add>, %106, %cst_48 [0] : vector<8x256xf32> to vector<256xf32>
    %108 = vector.shape_cast %107 : vector<256xf32> to vector<1x256xf32>
    %cst_49 = arith.constant 1.250000e-01 : f32
    %109 = vector.broadcast %cst_49 : f32 to vector<1x256xf32>
    %110 = arith.mulf %108, %109 : vector<1x256xf32>
    %111 = arith.mulf %106, %106 : vector<8x256xf32>
    %cst_50 = arith.constant dense<0.000000e+00> : vector<256xf32>
    %112 = vector.multi_reduction <add>, %111, %cst_50 [0] : vector<8x256xf32> to vector<256xf32>
    %113 = vector.shape_cast %112 : vector<256xf32> to vector<1x256xf32>
    %cst_51 = arith.constant 1.250000e-01 : f32
    %114 = vector.broadcast %cst_51 : f32 to vector<1x256xf32>
    %115 = arith.mulf %113, %114 : vector<1x256xf32>
    %116 = arith.mulf %110, %110 : vector<1x256xf32>
    %117 = arith.subf %115, %116 : vector<1x256xf32>
    %cst_52 = arith.constant 0.000000e+00 : f32
    %118 = vector.broadcast %cst_52 : f32 to vector<1x256xf32>
    %119 = arith.maximumf %117, %118 : vector<1x256xf32>
    %120 = vector.broadcast %110 : vector<1x256xf32> to vector<8x256xf32>
    %121 = arith.subf %106, %120 : vector<8x256xf32>
    %cst_53 = arith.constant 9.99999974E-6 : f32
    %122 = vector.broadcast %cst_53 : f32 to vector<1x256xf32>
    %123 = arith.addf %119, %122 : vector<1x256xf32>
    %124 = math.rsqrt %123 : vector<1x256xf32>
    %125 = vector.broadcast %124 : vector<1x256xf32> to vector<8x256xf32>
    %126 = arith.mulf %121, %125 : vector<8x256xf32>
    %cst_54 = arith.constant 0.000000e+00 : f32
    %127 = vector.broadcast %cst_54 : f32 to vector<8x256xf32>
    %128 = arith.cmpf ogt, %126, %127 : vector<8x256xf32>
    %cst_55 = arith.constant 2.000000e-01 : f32
    %129 = vector.broadcast %cst_55 : f32 to vector<8x256xf32>
    %130 = arith.mulf %129, %126 : vector<8x256xf32>
    %131 = arith.select %128, %126, %130 : vector<8x256xi1>, vector<8x256xf32>
    %132 = arith.truncf %131 : vector<8x256xf32> to vector<8x256xbf16>
    %c0_56 = arith.constant 0 : index
    %c0_57 = arith.constant 0 : index
    %133 = vector.load %arg8[%c0_56, %c0_57] : memref<256x64xbf16, #tpu.memory_space<vmem>>, vector<256x64xbf16>
    %cst_58 = arith.constant dense<0.000000e+00> : vector<8x64xf32>
    %134 = tpu.matmul %132, %133, %cst_58 {dimension_numbers = #tpu.dot_dimension_numbers<[1], [0], [0], [1], [0, 0, 1, 1], [], []>} : vector<8x256xbf16>, vector<256x64xbf16>, vector<8x64xf32> -> vector<8x64xf32>
    %c0_59 = arith.constant 0 : index
    %c0_60 = arith.constant 0 : index
    %135 = vector.load %arg9[%c0_59, %c0_60] : memref<1x64xf32, #tpu.memory_space<vmem>>, vector<1x64xf32>
    %136 = vector.broadcast %135 : vector<1x64xf32> to vector<8x64xf32>
    %137 = arith.addf %134, %136 : vector<8x64xf32>
    %138 = math.tanh %137 : vector<8x64xf32>
    %c0_61 = arith.constant 0 : index
    %c0_62 = arith.constant 0 : index
    %139 = vector.load %arg10[%c0_61, %c0_62] : memref<8x64xf32, #tpu.memory_space<vmem>>, vector<8x64xf32>
    tpu.vector_store %arg10[%c0_61, %c0_62], %138 {strides = array<i32>} : memref<8x64xf32, #tpu.memory_space<vmem>>, vector<8x64xf32>,
    return
  }
}

</mosaic_0001>

<bundles_post_ra>
// kernel: generator_forward.1
= control target key start
LH: loop header
LB: loop body
LE: loop exit
PB: predicated region body
PF: predicated region fallthrough
CT: control target
= control target key end

     0   :  { %15 = vsyncpa [#allocation3], 0  ;;  %s3067_s0 = inlined_call_operand.vmem [shape: f32[8,64], index: 0, kind: input, shape index: {}]   ;;  %s3068_s1 = inlined_call_operand.vmem [shape: s32[8,1], index: 1, kind: input, shape index: {}]   ;;  %s3069_s2 = inlined_call_operand.hbm [shape: bf16[64,128], index: 2, kind: input, shape index: {}]   ;;  %s3070_s3 = inlined_call_operand.vmem [shape: bf16[128,128], index: 3, kind: input, shape index: {}]   ;;  %s3071_s4 = inlined_call_operand.vmem [shape: bf16[128,256], index: 4, kind: input, shape index: {}]   ;;  %s3072_s5 = inlined_call_operand.hbm [shape: bf16[256,256], index: 5, kind: input, shape index: {}]   ;;  %s3073_s6 = inlined_call_operand.hbm [shape: bf16[256,512], index: 6, kind: input, shape index: {}]   ;;  %s3074_s7 = inlined_call_operand.hbm [shape: bf16[512,256], index: 7, kind: input, shape index: {}]   ;;  %s3075_s8 = inlined_call_operand.vmem [shape: bf16[256,64], index: 8, kind: input, shape index: {}]   ;;  %s3076_s9 = inlined_call_operand.vmem [shape: f32[1,64], index: 9, kind: input, shape index: {}]   ;;  %s3077_s10 = inlined_call_operand.hbm [shape: f32[8,64], index: 10, kind: output, shape index: {}]  }
   0x1   :  { %16 = vsyncpa [#allocation6], 0 }
   0x2   :  { %17 = vsyncpa [#allocation9], 0 }
   0x3   :  { %18 = vsyncpa [#allocation4], 0  ;;  %s2772_s13 = smov [#allocation5]   ;;  %s2654_s17 = scalar_lea.hbm %s3072_s5, 4096 }
   0x4   :  { %s44_s14 = sshll.u32 %s2772_s13, 4  ;;  %p2655_p0 = scmp.ne.s32.totalorder %s3072_s5, %s2654_s17  ;;  %s45_s14 = int_to_ptr.vmem [resolvable:$true] %s44_s14 }
   0x5   :  { %p2658_p1 = scmp.lt.u32.totalorder %s2654_s17, %s3072_s5 }
   0x7   :  { %p2660_p2 = pnand %p2658_p1, %p2655_p0 }
   0x9   :  { %2663 = shalt.err (!%p2660_p2)
}
   0xa   :  { %s2664_s22 = scalar_lea.vmem %s45_s14, 4096  ;;  %p2669_p4 = scmp.lt.s32.totalorder %s45_s14, %s45_s14 }
   0xb   :  { %p2665_p3 = scmp.ne.s32.totalorder %s45_s14, %s2664_s22  ;;  %p2670_p5 = scmp.lt.s32.totalorder %s2664_s22, %s2664_s22 }
   0xd   :  { %p2671_p6 = por %p2670_p5, %p2669_p4 }
   0xf   :  { %p2672_p7 = pnand %p2671_p6, %p2665_p3 }
  0x11   :  { %2675 = shalt.err (!%p2672_p7)
}
  0x12   :  { %s2773_s23 = smov 128   ;;  %s2774_s24 = smov 8  }
  0x13   :  { %50 = dma.hbm_to_vmem [thread:$0]  %s3072_s5, 4096, %s45_s14, [#allocation6], %s2773_s23, %s2773_s23, %s2774_s24  }
  0x14   :  { %s2775_s27 = smov [#allocation2]   ;;  %s2676_s11 = scalar_lea.hbm %s3069_s2, 512 }
  0x15   :  { %s28_s28 = sshll.u32 %s2775_s27, 4  ;;  %p2677_p8 = scmp.ne.s32.totalorder %s3069_s2, %s2676_s11  ;;  %s29_s28 = int_to_ptr.vmem [resolvable:$true] %s28_s28 }
  0x16   :  { %p2680_p9 = scmp.lt.u32.totalorder %s2676_s11, %s3069_s2 }
  0x18   :  { %p2682_p10 = pnand %p2680_p9, %p2677_p8 }
  0x1a   :  { %2685 = shalt.err (!%p2682_p10)
}
  0x1b   :  { %s2686_s17 = scalar_lea.vmem %s29_s28, 512  ;;  %p2691_p12 = scmp.lt.s32.totalorder %s29_s28, %s29_s28 }
  0x1c   :  { %p2687_p11 = scmp.ne.s32.totalorder %s29_s28, %s2686_s17  ;;  %p2692_p13 = scmp.lt.s32.totalorder %s2686_s17, %s2686_s17 }
  0x1e   :  { %p2693_p0 = por %p2692_p13, %p2691_p12 }
  0x20   :  { %p2694_p1 = pnand %p2693_p0, %p2687_p11 }
  0x22   :  { %2697 = shalt.err (!%p2694_p1)
}
  0x23   :  { %s2776_s5 = smov 64   ;;  %s2777_s14 = smov 4  }
  0x24   :  { %34 = dma.hbm_to_vmem [thread:$0]  %s3069_s2, 512, %s29_s28, [#allocation3], %s2776_s5, %s2776_s5, %s2777_s14  }
  0x25   :  { %s2778_s20 = smov [#allocation7]   ;;  %s2698_s26 = scalar_lea.hbm %s3073_s6, 8192 }
  0x26   :  { %s56_s21 = sshll.u32 %s2778_s20, 4  ;;  %p2699_p2 = scmp.ne.s32.totalorder %s3073_s6, %s2698_s26  ;;  %s57_s21 = int_to_ptr.vmem [resolvable:$true] %s56_s21 }
  0x27   :  { %p2702_p3 = scmp.lt.u32.totalorder %s2698_s26, %s3073_s6 }
  0x29   :  { %p2704_p4 = pnand %p2702_p3, %p2699_p2 }
  0x2b   :  { %2707 = shalt.err (!%p2704_p4)
}
  0x2c   :  { %s2708_s12 = scalar_lea.vmem %s57_s21, 8192  ;;  %p2713_p6 = scmp.lt.s32.totalorder %s57_s21, %s57_s21 }
  0x2d   :  { %p2709_p5 = scmp.ne.s32.totalorder %s57_s21, %s2708_s12  ;;  %p2714_p7 = scmp.lt.s32.totalorder %s2708_s12, %s2708_s12 }
  0x2f   :  { %p2715_p8 = por %p2714_p7, %p2713_p6 }
  0x31   :  { %p2716_p9 = pnand %p2715_p8, %p2709_p5 }
  0x33   :  { %2719 = shalt.err (!%p2716_p9)
}
  0x34   :  { %s2779_s2 = smov 256   ;;  %s2780_s28 = smov 16  }
  0x35   :  { %62 = dma.hbm_to_vmem [thread:$0]  %s3073_s6, 8192, %s57_s21, [#allocation6], %s2779_s2, %s2779_s2, %s2780_s28  }
  0x36   :  { %s2781_s16 = smov [#allocation8]   ;;  %s2720_s18 = scalar_lea.hbm %s3074_s7, 8192 }
  0x37   :  { %s68_s17 = sshll.u32 %s2781_s16, 4  ;;  %p2721_p10 = scmp.ne.s32.totalorder %s3074_s7, %s2720_s18  ;;  %s69_s17 = int_to_ptr.vmem [resolvable:$true] %s68_s17 }
  0x38   :  { %p2724_p11 = scmp.lt.u32.totalorder %s2720_s18, %s3074_s7 }
  0x3a   :  { %p2726_p12 = pnand %p2724_p11, %p2721_p10 }
  0x3c   :  { %2729 = shalt.err (!%p2726_p12)
}
  0x3d   :  { %s2730_s26 = scalar_lea.vmem %s69_s17, 8192  ;;  %p2735_p0 = scmp.lt.s32.totalorder %s69_s17, %s69_s17 }
  0x3e   :  { %p2731_p13 = scmp.ne.s32.totalorder %s69_s17, %s2730_s26  ;;  %p2736_p1 = scmp.lt.s32.totalorder %s2730_s26, %s2730_s26 }
  0x40   :  { %p2737_p2 = por %p2736_p1, %p2735_p0 }
  0x42   :  { %p2738_p3 = pnand %p2737_p2, %p2731_p13 }
  0x44   :  { %2741 = shalt.err (!%p2738_p3)
}
  0x45   :  { %74 = dma.hbm_to_vmem [thread:$0]  %s3074_s7, 8192, %s69_s17, [#allocation9], %s2773_s23, %s2773_s23, %s2774_s24  }
  0x46   :  { %2764 = dma.done.wait [#allocation3], 512  }
  0x47   :  { %2765 = vsyncadd [#allocation3], 4294966784 }
  0x48   :  { %2766 = dma.done.wait [#allocation6], 12288  }
  0x49   :  { %2767 = vsyncadd [#allocation6], 4294955008 }
  0x4a   :  { %2768 = dma.done.wait [#allocation9], 8192  }
  0x4b   :  { %2769 = vsyncadd [#allocation9], 4294959104  ;;  %v2782_v0 = vmov 0   ;;  %v2783_v1 = vmov 0.0   ;;  %vm2784_vm0 = vmmov 0   ;;  %v94_v2 = vld [vmem:[%s3068_s1] sm:$0xff]  ;;  %v92_v18 = vlaneseq }
  0x4c   :  { %2339 = vset.pattern.permute.xlu0 %v2782_v0  ;;  %2287 = vmatprep.subr.bf16.mxu1 %v2783_v1  ;;  %v2340_v3 = vld [vmem:[%s3070_s3] sm:$0xff]   ;;  %v2341_v4 = vld [vmem:[%s3070_s3 + $0x8] sm:$0xff]   ;;  %v2342_v6 = vld [vmem:[%s3070_s3 + $0x10] sm:$0xff]   ;;  %vm239_vm1 = vcmask 523264   ;;  %v2785_v23 = vmov 1.0|1.0  }
  0x4d   :  { %2307 = vmatprep.subr.bf16.mxu0 %v2783_v1  ;;  %2315 = vmatprep.mubr.msk.bf16.mxu0 %vm2784_vm0, %v2783_v1  ;;  %v2344_v5 = vld [vmem:[#allocation2] sm:$0xff]   ;;  %v2346_v7 = vld [vmem:[#allocation2 + $0x8] sm:$0xff]   ;;  %v2343_v8 = vld [vmem:[%s3070_s3 + $0x18] sm:$0xff]   ;;  %v93_v19 = vand.u32 127, %v92_v18  ;;  %s2786_s7 = smov [#allocation10]  }
  0x4e   :  { %2303 = vmatprep.mubr.msk.bf16.mxu1 %vm2784_vm0, %v2783_v1  ;;  %96 = vperm.xlu0 %2339, %v94_v2   ;;  %v2348_v9 = vld [vmem:[#allocation2 + $0x10] sm:$0xff]   ;;  %v2345_v10 = vld [vmem:[%s3070_s3 + $0x20] sm:$0xff]   ;;  %v2350_v11 = vld [vmem:[#allocation2 + $0x18] sm:$0xff]   ;;  %s2032_s23 = sshll.u32 %s2786_s7, 4  ;;  %s2033_s23 = int_to_ptr.vmem [resolvable:$true] %s2032_s23 }
  0x4f   :  { %2288 = vmatpush3.bf16.msra.mxu1 %v2340_v3  ;;  %2308 = vmatpush3.bf16.msra.mxu0 %v2344_v5  ;;  %v101_v12 = vld [vmem:[%s3067_s0] sm:$0xff]  ;;  %v2347_v14 = vld [vmem:[%s3070_s3 + $0x28] sm:$0xff]   ;;  %v2349_v15 = vld [vmem:[%s3070_s3 + $0x30] sm:$0xff]   ;;  %s2742_s24 = scalar_lea.vmem %s2033_s23, 128  ;;  %p2747_p5 = scmp.lt.s32.totalorder %s2033_s23, %s2033_s23 }
  0x50   :  { %2289 = vmatprep.subr.bf16.mxu1 %v2783_v1  ;;  %2309 = vmatprep.subr.bf16.mxu0 %v2783_v1  ;;  %v102_v13 = vpack.c.bf16 %v101_v12, %v101_v12  ;;  %v2351_v16 = vld [vmem:[%s3070_s3 + $0x38] sm:$0xff]   ;;  %v2354_v17 = vld [vmem:[%s3071_s4 + $0x4] ss:$8 sps:$4 sm:$0xff]   ;;  %v2352_v21 = vld [vmem:[%s3071_s4] ss:$8 sps:$4 sm:$0xff]   ;;  %p2743_p4 = scmp.ne.s32.totalorder %s2033_s23, %s2742_s24  ;;  %p2748_p6 = scmp.lt.s32.totalorder %s2742_s24, %s2742_s24 }
  0x51   :  { %v2357_v22 = vld [vmem:[%s3071_s4 + $0x14] ss:$8 sps:$4 sm:$0xff]   ;;  %v2355_v24 = vld [vmem:[%s3071_s4 + $0x10] ss:$8 sps:$4 sm:$0xff]   ;;  %v2360_v25 = vld [vmem:[%s3071_s4 + $0x24] ss:$8 sps:$4 sm:$0xff]  }
  0x52   :  { %v2358_v26 = vld [vmem:[%s3071_s4 + $0x20] ss:$8 sps:$4 sm:$0xff]   ;;  %v2363_v27 = vld [vmem:[%s3071_s4 + $0x34] ss:$8 sps:$4 sm:$0xff]   ;;  %v2361_v28 = vld [vmem:[%s3071_s4 + $0x30] ss:$8 sps:$4 sm:$0xff]   ;;  %p2749_p7 = por %p2748_p6, %p2747_p5 }
  0x53   :  { %2290 = vmatpush3.bf16.msra.mxu1 %v2341_v4  ;;  %2310 = vmatpush3.bf16.msra.mxu0 %v2346_v7  ;;  %v2366_v29 = vld [vmem:[%s3071_s4 + $0x44] ss:$8 sps:$4 sm:$0xff]   ;;  %v2364_v30 = vld [vmem:[%s3071_s4 + $0x40] ss:$8 sps:$4 sm:$0xff]   ;;  %v2369_v31 = vld [vmem:[%s3071_s4 + $0x54] ss:$8 sps:$4 sm:$0xff]  }
  0x54   :  { %2291 = vmatprep.subr.bf16.mxu1 %v2783_v1  ;;  %2311 = vmatprep.subr.bf16.mxu0 %v2783_v1  ;;  %v2367_v32 = vld [vmem:[%s3071_s4 + $0x50] ss:$8 sps:$4 sm:$0xff]   ;;  %v2372_v33 = vld [vmem:[%s3071_s4 + $0x64] ss:$8 sps:$4 sm:$0xff]   ;;  %v2370_v34 = vld [vmem:[%s3071_s4 + $0x60] ss:$8 sps:$4 sm:$0xff]   ;;  %p2750_p8 = pnand %p2749_p7, %p2743_p4 }
  0x55   :  { %v2375_v35 = vld [vmem:[%s3071_s4 + $0x74] ss:$8 sps:$4 sm:$0xff]   ;;  %v2373_v36 = vld [vmem:[%s3071_s4 + $0x70] ss:$8 sps:$4 sm:$0xff]   ;;  %v2378_v37 = vld [vmem:[#allocation5 + $0x4] ss:$8 sps:$4 sm:$0xff]  }
  0x56   :  { %v2376_v49 = vld [vmem:[#allocation5] ss:$8 sps:$4 sm:$0xff]   ;;  %v2381_v51 = vld [vmem:[#allocation5 + $0x14] ss:$8 sps:$4 sm:$0xff]   ;;  %v2379_v52 = vld [vmem:[#allocation5 + $0x10] ss:$8 sps:$4 sm:$0xff]  }
  0x57   :  { %2292 = vmatpush3.bf16.msra.mxu1 %v2342_v6  ;;  %2312 = vmatpush3.bf16.msra.mxu0 %v2348_v9  ;;  %v2384_v53 = vld [vmem:[#allocation5 + $0x24] ss:$8 sps:$4 sm:$0xff]   ;;  %v2382_v54 = vld [vmem:[#allocation5 + $0x20] ss:$8 sps:$4 sm:$0xff]   ;;  %v2387_v55 = vld [vmem:[#allocation5 + $0x34] ss:$8 sps:$4 sm:$0xff]  }
  0x58   :  { %2293 = vmatprep.subr.bf16.mxu1 %v2783_v1  ;;  %2313 = vmatprep.subr.bf16.mxu0 %v2783_v1  ;;  %v2385_v56 = vld [vmem:[#allocation5 + $0x30] ss:$8 sps:$4 sm:$0xff]   ;;  %v2390_v57 = vld [vmem:[#allocation5 + $0x44] ss:$8 sps:$4 sm:$0xff]   ;;  %v2388_v58 = vld [vmem:[#allocation5 + $0x40] ss:$8 sps:$4 sm:$0xff]  }
  0x59   :  { %v2393_v59 = vld [vmem:[#allocation5 + $0x54] ss:$8 sps:$4 sm:$0xff]   ;;  %v2391_v60 = vld [vmem:[#allocation5 + $0x50] ss:$8 sps:$4 sm:$0xff]   ;;  %v2396_v61 = vld [vmem:[#allocation5 + $0x64] ss:$8 sps:$4 sm:$0xff]  }
  0x5a   :  { %v2394_v62 = vld [vmem:[#allocation5 + $0x60] ss:$8 sps:$4 sm:$0xff]   ;;  %v2399_v63 = vld [vmem:[#allocation5 + $0x74] ss:$8 sps:$4 sm:$0xff]   ;;  %v2403_v4 = vld [vmem:[#allocation5 + $0x90] ss:$8 sps:$4 sm:$0xff]  }
  0x5b   :  { %2294 = vmatpush3.bf16.msra.mxu1 %v2343_v8  ;;  %2314 = vmatpush3.bf16.msra.mxu0 %v2350_v11  ;;  %v2400_v2 = vld [vmem:[#allocation5 + $0x80] ss:$8 sps:$4 sm:$0xff]   ;;  %v2405_v3 = vld [vmem:[#allocation5 + $0x94] ss:$8 sps:$4 sm:$0xff]   ;;  %v2408_v5 = vld [vmem:[#allocation5 + $0xa4] ss:$8 sps:$4 sm:$0xff]  }
  0x5c   :  { %2295 = vmatprep.subr.bf16.mxu1 %v2783_v1  ;;  %v2406_v6 = vld [vmem:[#allocation5 + $0xa0] ss:$8 sps:$4 sm:$0xff]   ;;  %v2411_v7 = vld [vmem:[#allocation5 + $0xb4] ss:$8 sps:$4 sm:$0xff]   ;;  %v2409_v8 = vld [vmem:[#allocation5 + $0xb0] ss:$8 sps:$4 sm:$0xff]  }
  0x5d   :  { %v2414_v9 = vld [vmem:[#allocation5 + $0xc4] ss:$8 sps:$4 sm:$0xff]   ;;  %v2417_v11 = vld [vmem:[#allocation5 + $0xd4] ss:$8 sps:$4 sm:$0xff]   ;;  %v2415_v12 = vld [vmem:[#allocation5 + $0xd0] ss:$8 sps:$4 sm:$0xff]  }
  0x5e   :  { %2316 = vmatmul.mubr.msk.bf16.vlgmr.msra.gmra.mrb[0].mxu0 %vm239_vm1, %v102_v13  ;;  %v2420_v13 = vld [vmem:[#allocation5 + $0xe4] ss:$8 sps:$4 sm:$0xff]  }
  0x5f   :  { %2296 = vmatpush3.bf16.msra.mxu1 %v2345_v10  ;;  %v2412_v10 = vld [vmem:[#allocation5 + $0xc0] ss:$8 sps:$4 sm:$0xff]   ;;  %v2426_v18 = vld [vmem:[#allocation7 + $0x4] ss:$16 sps:$4 sm:$0xff]  }
  0x60   :  { %2297 = vmatprep.subr.bf16.mxu1 %v2783_v1  ;;  %1145 = vmatprep.subr.bf16.mxu0 %v2426_v18 }
  0x63   :  { %2298 = vmatpush3.bf16.msra.mxu1 %v2347_v14  ;;  %v2418_v14 = vld [vmem:[#allocation5 + $0xe0] ss:$8 sps:$4 sm:$0xff]  }
  0x64   :  { %2299 = vmatprep.subr.bf16.mxu1 %v2783_v1 }
  0x67   :  { %2300 = vmatpush3.bf16.msra.mxu1 %v2349_v15  ;;  %v2423_v15 = vld [vmem:[#allocation5 + $0xf4] ss:$8 sps:$4 sm:$0xff]  }
  0x68   :  { %2301 = vmatprep.subr.bf16.mxu1 %v2783_v1  ;;  %v2402_v1 = vld [vmem:[#allocation5 + $0x84] ss:$8 sps:$4 sm:$0xff]  }
  0x6b   :  { %2302 = vmatpush3.bf16.msra.mxu1 %v2351_v16  ;;  %v2421_v16 = vld [vmem:[#allocation5 + $0xf0] ss:$8 sps:$4 sm:$0xff]  }
  0x6c   :  { %383 = vmatprep.subr.bf16.mxu1 %v2354_v17  ;;  %v2424_v17 = vld [vmem:[#allocation7] ss:$16 sps:$4 sm:$0xff]  }
  0x6d   :  { %1146 = vmatpush1.bf16.msra.mxu0 %v2424_v17 }
  0xcd   :  { %v97_v20 = vpop.permute.xlu0 %96 }
  0xce   :  { %vm98_vm2 = vcmp.eq.s32.totalorder %v97_v20, %v93_v19  ;;  %v2429_v19 = vld [vmem:[#allocation7 + $0xc] ss:$16 sps:$4 sm:$0xff]   ;;  %v2432_v20 = vld [vmem:[#allocation7 + $0x24] ss:$16 sps:$4 sm:$0xff]  }
  0xcf   :  { %vm2051_vm3 = vmpackc.low %vm98_vm2, %vm98_vm2  ;;  %1147 = vmatprep.subr.bf16.mxu0 %v2432_v20 }
  0xd0   :  { %2304 = vmatmul.mubr.msk.bf16.vlgmr.msra.gmra.mrb[0].mxu1 %vm2051_vm3, %v2785_v23  ;;  %v2436_v23 = vld [vmem:[#allocation7 + $0x40] ss:$16 sps:$4 sm:$0xff]  }
  0xd1   :  { %384 = vmatpush1.bf16.msra.mxu1 %v2352_v21  ;;  %415 = vmatprep.mubr.bf16.mxu1 %v2782_v0  ;;  %v2397_v0 = vld [vmem:[#allocation5 + $0x70] ss:$8 sps:$4 sm:$0xff]  }
  0xd2   :  { %385 = vmatprep.subr.bf16.mxu1 %v2357_v22  ;;  %v2430_v21 = vld [vmem:[#allocation7 + $0x20] ss:$16 sps:$4 sm:$0xff]   ;;  %v2438_v22 = vld [vmem:[#allocation7 + $0x44] ss:$16 sps:$4 sm:$0xff]  }
  0xd3   :  { %1148 = vmatpush1.bf16.msra.mxu0 %v2430_v21  ;;  %v2435_v21 = vld [vmem:[#allocation7 + $0x2c] ss:$16 sps:$4 sm:$0xff]  }
  0xd4   :  { %1149 = vmatprep.subr.bf16.mxu0 %v2438_v22  ;;  %v2433_v22 = vld [vmem:[#allocation7 + $0x28] ss:$16 sps:$4 sm:$0xff]  }
  0xd5   :  { %386 = vmatpush1.bf16.msra.mxu1 %v2355_v24  ;;  %v2444_v24 = vld [vmem:[#allocation7 + $0x64] ss:$16 sps:$4 sm:$0xff]  }
  0xd6   :  { %387 = vmatprep.subr.bf16.mxu1 %v2360_v25  ;;  %v2442_v25 = vld [vmem:[#allocation7 + $0x60] ss:$16 sps:$4 sm:$0xff]  }
  0xd7   :  { %1150 = vmatpush1.bf16.msra.mxu0 %v2436_v23  ;;  %v2441_v23 = vld [vmem:[#allocation7 + $0x4c] ss:$16 sps:$4 sm:$0xff]  }
  0xd8   :  { %1151 = vmatprep.subr.bf16.mxu0 %v2444_v24  ;;  %v2439_v24 = vld [vmem:[#allocation7 + $0x48] ss:$16 sps:$4 sm:$0xff]  }
  0xd9   :  { %388 = vmatpush1.bf16.msra.mxu1 %v2358_v26  ;;  %v2450_v26 = vld [vmem:[#allocation7 + $0x84] ss:$16 sps:$4 sm:$0xff]  }
  0xda   :  { %389 = vmatprep.subr.bf16.mxu1 %v2363_v27  ;;  %v2448_v27 = vld [vmem:[#allocation7 + $0x80] ss:$16 sps:$4 sm:$0xff]  }
  0xdb   :  { %1152 = vmatpush1.bf16.msra.mxu0 %v2442_v25  ;;  %v2447_v25 = vld [vmem:[#allocation7 + $0x6c] ss:$16 sps:$4 sm:$0xff]  }
  0xdc   :  { %1153 = vmatprep.subr.bf16.mxu0 %v2450_v26  ;;  %v2445_v26 = vld [vmem:[#allocation7 + $0x68] ss:$16 sps:$4 sm:$0xff]  }
  0xdd   :  { %390 = vmatpush1.bf16.msra.mxu1 %v2361_v28  ;;  %v2456_v28 = vld [vmem:[#allocation7 + $0xa4] ss:$16 sps:$4 sm:$0xff]  }
  0xde   :  { %391 = vmatprep.subr.bf16.mxu1 %v2366_v29  ;;  %v2454_v29 = vld [vmem:[#allocation7 + $0xa0] ss:$16 sps:$4 sm:$0xff]  }
  0xdf   :  { %1154 = vmatpush1.bf16.msra.mxu0 %v2448_v27  ;;  %v2453_v27 = vld [vmem:[#allocation7 + $0x8c] ss:$16 sps:$4 sm:$0xff]  }
  0xe0   :  { %1155 = vmatprep.subr.bf16.mxu0 %v2456_v28  ;;  %v2451_v28 = vld [vmem:[#allocation7 + $0x88] ss:$16 sps:$4 sm:$0xff]  }
  0xe1   :  { %392 = vmatpush1.bf16.msra.mxu1 %v2364_v30 }
  0xe2   :  { %393 = vmatprep.subr.bf16.mxu1 %v2369_v31 }
  0xe3   :  { %1156 = vmatpush1.bf16.msra.mxu0 %v2454_v29  ;;  %v2459_v29 = vld [vmem:[#allocation7 + $0xac] ss:$16 sps:$4 sm:$0xff]  }
  0xe5   :  { %394 = vmatpush1.bf16.msra.mxu1 %v2367_v32 }
  0xe6   :  { %395 = vmatprep.subr.bf16.mxu1 %v2372_v33 }
  0xe9   :  { %396 = vmatpush1.bf16.msra.mxu1 %v2370_v34 }
  0xea   :  { %397 = vmatprep.subr.bf16.mxu1 %v2375_v35 }
  0xed   :  { %398 = vmatpush1.bf16.msra.mxu1 %v2373_v36 }
  0xee   :  { %668 = vmatprep.subr.bf16.mxu1 %v2378_v37 }
 0x131   :  { %v277_v38 = vpop.f32.mrb[0].mxu0 }
 0x132   :  { %v2317_v39 = vpop.f32.mrb[1].mxu0 }
 0x133   :  { %v280_v40 = vpop.f32.mrb[2].mxu0 }
 0x134   :  { %v2318_v41 = vpop.f32.mrb[3].mxu0 }
 0x1a3   :  { %v209_v42 = vpop.f32.mrb[0].mxu1 }
 0x1a4   :  { %v278_v43 = vadd.f32 %v277_v38, %v209_v42  ;;  %v2305_v44 = vpop.f32.mrb[1].mxu1 }
 0x1a5   :  { %v212_v45 = vpop.f32.mrb[2].mxu1 }
 0x1a6   :  { %vm283_vm4 = vcmp.gt.f32.partialorder %v278_v43, 0.0  ;;  %v284_v46 = vmul.f32 0.2, %v278_v43  ;;  %v2306_v47 = vpop.f32.mrb[3].mxu1 }
 0x1a8   :  { %v285_v48 = vsel %vm283_vm4, %v278_v43, %v284_v46 }
 0x1a9   :  { %v286_v50 = vpack.c.bf16 %v285_v48, %v285_v48 }
 0x1ab   :  { %416 = vmatmul.mubr.bf16.vlgmr.msra.gmra.mrb[4].mxu1 %v286_v50 }
 0x1ac   :  { %669 = vmatpush1.bf16.msra.mxu1 %v2376_v49 }
 0x1ad   :  { %670 = vmatprep.subr.bf16.mxu1 %v2381_v51 }
 0x1b0   :  { %671 = vmatpush1.bf16.msra.mxu1 %v2379_v52 }
 0x1b1   :  { %672 = vmatprep.subr.bf16.mxu1 %v2384_v53 }
 0x1b4   :  { %673 = vmatpush1.bf16.msra.mxu1 %v2382_v54 }
 0x1b5   :  { %674 = vmatprep.subr.bf16.mxu1 %v2387_v55 }
 0x1b8   :  { %675 = vmatpush1.bf16.msra.mxu1 %v2385_v56 }
 0x1b9   :  { %676 = vmatprep.subr.bf16.mxu1 %v2390_v57 }
 0x1bc   :  { %677 = vmatpush1.bf16.msra.mxu1 %v2388_v58 }
 0x1bd   :  { %678 = vmatprep.subr.bf16.mxu1 %v2393_v59 }
 0x1c0   :  { %679 = vmatpush1.bf16.msra.mxu1 %v2391_v60 }
 0x1c1   :  { %680 = vmatprep.subr.bf16.mxu1 %v2396_v61 }
 0x1c4   :  { %681 = vmatpush1.bf16.msra.mxu1 %v2394_v62 }
 0x1c5   :  { %682 = vmatprep.subr.bf16.mxu1 %v2399_v63 }
 0x1c8   :  { %683 = vmatpush1.bf16.msra.mxu1 %v2397_v0 }
 0x1c9   :  { %684 = vmatprep.subr.bf16.mxu1 %v2402_v1 }
 0x1cc   :  { %685 = vmatpush1.bf16.msra.mxu1 %v2400_v2 }
 0x1cd   :  { %686 = vmatprep.subr.bf16.mxu1 %v2405_v3 }
 0x1d0   :  { %687 = vmatpush1.bf16.msra.mxu1 %v2403_v4 }
 0x1d1   :  { %688 = vmatprep.subr.bf16.mxu1 %v2408_v5 }
 0x1d4   :  { %689 = vmatpush1.bf16.msra.mxu1 %v2406_v6 }
 0x1d5   :  { %690 = vmatprep.subr.bf16.mxu1 %v2411_v7 }
 0x1d8   :  { %691 = vmatpush1.bf16.msra.mxu1 %v2409_v8 }
 0x1d9   :  { %692 = vmatprep.subr.bf16.mxu1 %v2414_v9 }
 0x1dc   :  { %693 = vmatpush1.bf16.msra.mxu1 %v2412_v10 }
 0x1dd   :  { %694 = vmatprep.subr.bf16.mxu1 %v2417_v11 }
 0x1e0   :  { %695 = vmatpush1.bf16.msra.mxu1 %v2415_v12 }
 0x1e1   :  { %696 = vmatprep.subr.bf16.mxu1 %v2420_v13 }
 0x1e4   :  { %697 = vmatpush1.bf16.msra.mxu1 %v2418_v14 }
 0x1e5   :  { %698 = vmatprep.subr.bf16.mxu1 %v2423_v15 }
 0x1e8   :  { %699 = vmatpush1.bf16.msra.mxu1 %v2421_v16 }
 0x1e9   :  { %1186 = vmatprep.subr.bf16.mxu1 %v2429_v19  ;;  %v2427_v19 = vld [vmem:[#allocation7 + $0x8] ss:$16 sps:$4 sm:$0xff]  }
 0x27e   :  { %v417_v30 = vpop.f32.mrb[4].mxu1 }
 0x27f   :  { %v424_v31 = vrot.slane %v417_v30, 4  ;;  %v438_v32 = vmul.f32 %v417_v30, %v417_v30  ;;  %v419_v33 = vpop.f32.mrb[5].mxu1 }
 0x280   :  { %v430_v34 = vrot.slane %v419_v33, 4  ;;  %v439_v35 = vmul.f32 %v419_v33, %v419_v33  ;;  %v421_v36 = vpop.f32.mrb[6].mxu1 }
 0x281   :  { %v425_v37 = vadd.f32 %v424_v31, %v417_v30  ;;  %v440_v38 = vrot.slane %v438_v32, 4  ;;  %v422_v39 = vpop.f32.mrb[7].mxu1  ;;  %v2462_v31 = vld [vmem:[#allocation7 + $0xc4] ss:$16 sps:$4 sm:$0xff]   ;;  %v2471_v36 = vld [vmem:[#allocation7 + $0xec] ss:$16 sps:$4 sm:$0xff]  }
 0x282   :  { %v431_v40 = vadd.f32 %v430_v34, %v419_v33  ;;  %v446_v41 = vrot.slane %v439_v35, 4  ;;  %v2463_v34 = vld [vmem:[#allocation7 + $0xc8] ss:$16 sps:$4 sm:$0xff]   ;;  %1157 = vmatprep.subr.bf16.mxu0 %v2462_v31  ;;  %v2474_v39 = vld [vmem:[#allocation7 + $0x104] ss:$16 sps:$4 sm:$0xff]  }
 0x283   :  { %v426_v42 = vrot.slane %v425_v37, 2  ;;  %v441_v43 = vadd.f32 %v440_v38, %v438_v32  ;;  %v2465_v32 = vld [vmem:[#allocation7 + $0xcc] ss:$16 sps:$4 sm:$0xff]   ;;  %v2469_v38 = vld [vmem:[#allocation7 + $0xe8] ss:$16 sps:$4 sm:$0xff]  }
 0x284   :  { %v432_v44 = vrot.slane %v431_v40, 2  ;;  %v447_v45 = vadd.f32 %v446_v41, %v439_v35  ;;  %v2468_v35 = vld [vmem:[#allocation7 + $0xe4] ss:$16 sps:$4 sm:$0xff]   ;;  %v2472_v41 = vld [vmem:[#allocation7 + $0x100] ss:$16 sps:$4 sm:$0xff]  }
 0x285   :  { %v427_v46 = vadd.f32 %v426_v42, %v425_v37  ;;  %v442_v47 = vrot.slane %v441_v43, 2  ;;  %v2466_v37 = vld [vmem:[#allocation7 + $0xe0] ss:$16 sps:$4 sm:$0xff]   ;;  %v2475_v42 = vld [vmem:[#allocation7 + $0x108] ss:$16 sps:$4 sm:$0xff]  }
 0x286   :  { %v433_v48 = vadd.f32 %v432_v44, %v431_v40  ;;  %v448_v49 = vrot.slane %v447_v45, 2  ;;  %v2477_v40 = vld [vmem:[#allocation7 + $0x10c] ss:$16 sps:$4 sm:$0xff]  }
 0x287   :  { %v428_v50 = vrot.slane %v427_v46, 1  ;;  %v443_v51 = vadd.f32 %v442_v47, %v441_v43  ;;  %v2480_v43 = vld [vmem:[#allocation7 + $0x124] ss:$16 sps:$4 sm:$0xff]   ;;  %v2483_v44 = vld [vmem:[#allocation7 + $0x12c] ss:$16 sps:$4 sm:$0xff]  }
 0x288   :  { %v434_v52 = vrot.slane %v433_v48, 1  ;;  %v449_v53 = vadd.f32 %v448_v49, %v447_v45  ;;  %v2478_v45 = vld [vmem:[#allocation7 + $0x120] ss:$16 sps:$4 sm:$0xff]   ;;  %v2486_v47 = vld [vmem:[#allocation7 + $0x144] ss:$16 sps:$4 sm:$0xff]  }
 0x289   :  { %v429_v54 = vadd.f32 %v428_v50, %v427_v46  ;;  %v444_v55 = vrot.slane %v443_v51, 1  ;;  %v2481_v46 = vld [vmem:[#allocation7 + $0x128] ss:$16 sps:$4 sm:$0xff]   ;;  %v2484_v49 = vld [vmem:[#allocation7 + $0x140] ss:$16 sps:$4 sm:$0xff]  }
 0x28a   :  { %v435_v56 = vadd.f32 %v434_v52, %v433_v48  ;;  %v450_v57 = vrot.slane %v449_v53, 1  ;;  %v2489_v48 = vld [vmem:[#allocation7 + $0x14c] ss:$16 sps:$4 sm:$0xff]   ;;  %v2487_v50 = vld [vmem:[#allocation7 + $0x148] ss:$16 sps:$4 sm:$0xff]  }
 0x28b   :  { %v436_v58 = vmul.f32 0.125, %v429_v54  ;;  %v445_v59 = vadd.f32 %v444_v55, %v443_v51  ;;  %v2492_v51 = vld [vmem:[#allocation7 + $0x164] ss:$16 sps:$4 sm:$0xff]   ;;  %v2495_v52 = vld [vmem:[#allocation7 + $0x16c] ss:$16 sps:$4 sm:$0xff]  }
 0x28c   :  { %v437_v60 = vmul.f32 0.125, %v435_v56  ;;  %v451_v61 = vadd.f32 %v450_v57, %v449_v53  ;;  %v2490_v53 = vld [vmem:[#allocation7 + $0x160] ss:$16 sps:$4 sm:$0xff]   ;;  %v2493_v54 = vld [vmem:[#allocation7 + $0x168] ss:$16 sps:$4 sm:$0xff]  }
 0x28d   :  { %v452_v62 = vmul.f32 0.125, %v445_v59  ;;  %v454_v63 = vmul.f32 %v436_v58, %v436_v58  ;;  %v460_v8 = vsub.f32 %v417_v30, %v436_v58  ;;  %v2457_v30 = vld [vmem:[#allocation7 + $0xa8] ss:$16 sps:$4 sm:$0xff]   ;;  %v2498_v55 = vld [vmem:[#allocation7 + $0x184] ss:$16 sps:$4 sm:$0xff]  }
 0x28e   :  { %v453_v0 = vmul.f32 0.125, %v451_v61  ;;  %v455_v1 = vmul.f32 %v437_v60, %v437_v60  ;;  %v461_v10 = vsub.f32 %v419_v33, %v437_v60  ;;  %v2460_v33 = vld [vmem:[#allocation7 + $0xc0] ss:$16 sps:$4 sm:$0xff]   ;;  %v2501_v56 = vld [vmem:[#allocation7 + $0x18c] ss:$16 sps:$4 sm:$0xff]  }
 0x28f   :  { %v456_v2 = vsub.f32 %v452_v62, %v454_v63  ;;  %1158 = vmatpush1.bf16.msra.mxu0 %v2460_v33  ;;  %v2496_v57 = vld [vmem:[#allocation7 + $0x180] ss:$16 sps:$4 sm:$0xff]   ;;  %v2499_v58 = vld [vmem:[#allocation7 + $0x188] ss:$16 sps:$4 sm:$0xff]   ;;  %v2504_v59 = vld [vmem:[#allocation7 + $0x1a4] ss:$16 sps:$4 sm:$0xff]  }
 0x290   :  { %v457_v3 = vsub.f32 %v453_v0, %v455_v1  ;;  %1159 = vmatprep.subr.bf16.mxu0 %v2468_v35  ;;  %v2507_v60 = vld [vmem:[#allocation7 + $0x1ac] ss:$16 sps:$4 sm:$0xff]   ;;  %v2502_v61 = vld [vmem:[#allocation7 + $0x1a0] ss:$16 sps:$4 sm:$0xff]   ;;  %v2505_v62 = vld [vmem:[#allocation7 + $0x1a8] ss:$16 sps:$4 sm:$0xff]  }
 0x291   :  { %v458_v4 = vmax.f32 %v456_v2, 0.0  ;;  %v2510_v63 = vld [vmem:[#allocation7 + $0x1c4] ss:$16 sps:$4 sm:$0xff]   ;;  %v2513_v0 = vld [vmem:[#allocation7 + $0x1cc] ss:$16 sps:$4 sm:$0xff]  }
 0x292   :  { %v459_v5 = vmax.f32 %v457_v3, 0.0  ;;  %v2508_v1 = vld [vmem:[#allocation7 + $0x1c0] ss:$16 sps:$4 sm:$0xff]   ;;  %v2511_v2 = vld [vmem:[#allocation7 + $0x1c8] ss:$16 sps:$4 sm:$0xff]  }
 0x293   :  { %v462_v6 = vadd.f32 1e-05, %v458_v4  ;;  %1160 = vmatpush1.bf16.msra.mxu0 %v2466_v37  ;;  %v2516_v3 = vld [vmem:[#allocation7 + $0x1e4] ss:$16 sps:$4 sm:$0xff]   ;;  %v2514_v4 = vld [vmem:[#allocation7 + $0x1e0] ss:$16 sps:$4 sm:$0xff]  }
 0x294   :  { %v463_v7 = vadd.f32 1e-05, %v459_v5  ;;  %1161 = vmatprep.subr.bf16.mxu0 %v2474_v39  ;;  %v2517_v5 = vld [vmem:[#allocation7 + $0x1e8] ss:$16 sps:$4 sm:$0xff]  }
 0x295   :  { %2632 = vrsqrt.f32 %v462_v6  ;;  %v2519_v6 = vld [vmem:[#allocation7 + $0x1ec] ss:$16 sps:$4 sm:$0xff]  }
 0x296   :  { %2634 = vrsqrt.f32 %v463_v7  ;;  %v2522_v7 = vld [vmem:[#allocation8 + $0x4] ss:$8 sps:$4 sm:$0xff]  }
 0x297   :  { %1162 = vmatpush1.bf16.msra.mxu0 %v2472_v41 }
 0x298   :  { %1163 = vmatprep.subr.bf16.mxu0 %v2480_v43 }
 0x29b   :  { %1164 = vmatpush1.bf16.msra.mxu0 %v2478_v45 }
 0x29c   :  { %1165 = vmatprep.subr.bf16.mxu0 %v2486_v47 }
 0x29f   :  { %v2633_v9 = vpop.eup %2632  ;;  %1166 = vmatpush1.bf16.msra.mxu0 %v2484_v49 }
 0x2a0   :  { %v2635_v11 = vpop.eup %2634  ;;  %v466_v12 = vmul.f32 %v2633_v9, %v460_v8  ;;  %1167 = vmatprep.subr.bf16.mxu0 %v2492_v51 }
 0x2a1   :  { %v467_v13 = vmul.f32 %v2635_v11, %v461_v10 }
 0x2a2   :  { %vm468_vm5 = vcmp.gt.f32.partialorder %v466_v12, 0.0  ;;  %v470_v14 = vmul.f32 0.2, %v466_v12 }
 0x2a3   :  { %vm469_vm6 = vcmp.gt.f32.partialorder %v467_v13, 0.0  ;;  %v471_v15 = vmul.f32 0.2, %v467_v13  ;;  %1168 = vmatpush1.bf16.msra.mxu0 %v2490_v53 }
 0x2a4   :  { %v472_v16 = vsel %vm468_vm5, %v466_v12, %v470_v14  ;;  %1169 = vmatprep.subr.bf16.mxu0 %v2498_v55 }
 0x2a5   :  { %v473_v17 = vsel %vm469_vm6, %v467_v13, %v471_v15  ;;  %v474_v20 = vpack.c.bf16 %v472_v16, %v472_v16 }
 0x2a6   :  { %v475_v18 = vpack.c.bf16 %v473_v17, %v473_v17 }
 0x2a7   :  { %1170 = vmatpush1.bf16.msra.mxu0 %v2496_v57 }
 0x2a8   :  { %700 = vmatprep.mubr.bf16.mxu1 %v475_v18  ;;  %1171 = vmatprep.subr.bf16.mxu0 %v2504_v59 }
 0x2a9   :  { %701 = vmatmul.mubr.bf16.vlgmr.msra.gmra.mrb[8].mxu1 %v474_v20 }
 0x2aa   :  { %1187 = vmatpush1.bf16.msra.mxu1 %v2427_v19 }
 0x2ab   :  { %1188 = vmatprep.subr.bf16.mxu1 %v2435_v21  ;;  %1172 = vmatpush1.bf16.msra.mxu0 %v2502_v61  ;;  %v2520_v61 = vld [vmem:[#allocation8] ss:$8 sps:$4 sm:$0xff]  }
 0x2ac   :  { %1173 = vmatprep.subr.bf16.mxu0 %v2510_v63  ;;  %v2525_v63 = vld [vmem:[#allocation8 + $0x14] ss:$8 sps:$4 sm:$0xff]  }
 0x2ae   :  { %1189 = vmatpush1.bf16.msra.mxu1 %v2433_v22 }
 0x2af   :  { %1190 = vmatprep.subr.bf16.mxu1 %v2441_v23  ;;  %1174 = vmatpush1.bf16.msra.mxu0 %v2508_v1  ;;  %v2528_v1 = vld [vmem:[#allocation8 + $0x24] ss:$8 sps:$4 sm:$0xff]  }
 0x2b0   :  { %1175 = vmatprep.subr.bf16.mxu0 %v2516_v3  ;;  %v2531_v3 = vld [vmem:[#allocation8 + $0x34] ss:$8 sps:$4 sm:$0xff]  }
 0x2b2   :  { %1191 = vmatpush1.bf16.msra.mxu1 %v2439_v24 }
 0x2b3   :  { %1192 = vmatprep.subr.bf16.mxu1 %v2447_v25  ;;  %1176 = vmatpush1.bf16.msra.mxu0 %v2514_v4  ;;  %v2529_v4 = vld [vmem:[#allocation8 + $0x30] ss:$8 sps:$4 sm:$0xff]  }
 0x2b4   :  { %1715 = vmatprep.subr.bf16.mxu0 %v2522_v7  ;;  %v2537_v7 = vld [vmem:[#allocation8 + $0x54] ss:$8 sps:$4 sm:$0xff]  }
 0x2b6   :  { %1193 = vmatpush1.bf16.msra.mxu1 %v2445_v26 }
 0x2b7   :  { %1194 = vmatprep.subr.bf16.mxu1 %v2453_v27 }
 0x2ba   :  { %1195 = vmatpush1.bf16.msra.mxu1 %v2451_v28 }
 0x2bb   :  { %1196 = vmatprep.subr.bf16.mxu1 %v2459_v29 }
 0x2be   :  { %1197 = vmatpush1.bf16.msra.mxu1 %v2457_v30 }
 0x2bf   :  { %1198 = vmatprep.subr.bf16.mxu1 %v2465_v32 }
 0x2c2   :  { %1199 = vmatpush1.bf16.msra.mxu1 %v2463_v34 }
 0x2c3   :  { %1200 = vmatprep.subr.bf16.mxu1 %v2471_v36 }
 0x2c6   :  { %1201 = vmatpush1.bf16.msra.mxu1 %v2469_v38 }
 0x2c7   :  { %1202 = vmatprep.subr.bf16.mxu1 %v2477_v40 }
 0x2ca   :  { %1203 = vmatpush1.bf16.msra.mxu1 %v2475_v42 }
 0x2cb   :  { %1204 = vmatprep.subr.bf16.mxu1 %v2483_v44 }
 0x2ce   :  { %1205 = vmatpush1.bf16.msra.mxu1 %v2481_v46 }
 0x2cf   :  { %1206 = vmatprep.subr.bf16.mxu1 %v2489_v48 }
 0x2d2   :  { %1207 = vmatpush1.bf16.msra.mxu1 %v2487_v50 }
 0x2d3   :  { %1208 = vmatprep.subr.bf16.mxu1 %v2495_v52 }
 0x2d6   :  { %1209 = vmatpush1.bf16.msra.mxu1 %v2493_v54 }
 0x2d7   :  { %1210 = vmatprep.subr.bf16.mxu1 %v2501_v56 }
 0x2da   :  { %1211 = vmatpush1.bf16.msra.mxu1 %v2499_v58 }
 0x2db   :  { %1212 = vmatprep.subr.bf16.mxu1 %v2507_v60 }
 0x2de   :  { %1213 = vmatpush1.bf16.msra.mxu1 %v2505_v62 }
 0x2df   :  { %1214 = vmatprep.subr.bf16.mxu1 %v2513_v0  ;;  %v2523_v0 = vld [vmem:[#allocation8 + $0x10] ss:$8 sps:$4 sm:$0xff]  }
 0x2e2   :  { %1215 = vmatpush1.bf16.msra.mxu1 %v2511_v2  ;;  %v2526_v2 = vld [vmem:[#allocation8 + $0x20] ss:$8 sps:$4 sm:$0xff]  }
 0x2e3   :  { %1216 = vmatprep.subr.bf16.mxu1 %v2519_v6  ;;  %v2532_v6 = vld [vmem:[#allocation8 + $0x40] ss:$8 sps:$4 sm:$0xff]  }
 0x2e6   :  { %1217 = vmatpush1.bf16.msra.mxu1 %v2517_v5  ;;  %v2534_v5 = vld [vmem:[#allocation8 + $0x44] ss:$8 sps:$4 sm:$0xff]  }
 0x37c   :  { %v702_v8 = vpop.f32.mrb[8].mxu1 }
 0x37d   :  { %v709_v9 = vrot.slane %v702_v8, 4  ;;  %v723_v10 = vmul.f32 %v702_v8, %v702_v8  ;;  %v704_v11 = vpop.f32.mrb[9].mxu1 }
 0x37e   :  { %v715_v12 = vrot.slane %v704_v11, 4  ;;  %v724_v13 = vmul.f32 %v704_v11, %v704_v11  ;;  %v706_v14 = vpop.f32.mrb[10].mxu1 }
 0x37f   :  { %v710_v15 = vadd.f32 %v709_v9, %v702_v8  ;;  %v725_v16 = vrot.slane %v723_v10, 4  ;;  %v707_v17 = vpop.f32.mrb[11].mxu1  ;;  %v2540_v9 = vld [vmem:[#allocation8 + $0x64] ss:$8 sps:$4 sm:$0xff]   ;;  %v2544_v14 = vld [vmem:[#allocation8 + $0x80] ss:$8 sps:$4 sm:$0xff]  }
 0x380   :  { %v716_v18 = vadd.f32 %v715_v12, %v704_v11  ;;  %v731_v19 = vrot.slane %v724_v13, 4  ;;  %v2541_v12 = vld [vmem:[#allocation8 + $0x70] ss:$8 sps:$4 sm:$0xff]   ;;  %v2552_v17 = vld [vmem:[#allocation8 + $0xa4] ss:$8 sps:$4 sm:$0xff]  }
 0x381   :  { %v711_v20 = vrot.slane %v710_v15, 2  ;;  %v726_v21 = vadd.f32 %v725_v16, %v723_v10  ;;  %v2538_v10 = vld [vmem:[#allocation8 + $0x60] ss:$8 sps:$4 sm:$0xff]   ;;  %v2547_v16 = vld [vmem:[#allocation8 + $0x90] ss:$8 sps:$4 sm:$0xff]  }
 0x382   :  { %v717_v22 = vrot.slane %v716_v18, 2  ;;  %v732_v23 = vadd.f32 %v731_v19, %v724_v13  ;;  %v2546_v13 = vld [vmem:[#allocation8 + $0x84] ss:$8 sps:$4 sm:$0xff]   ;;  %v2555_v19 = vld [vmem:[#allocation8 + $0xb4] ss:$8 sps:$4 sm:$0xff]  }
 0x383   :  { %v712_v24 = vadd.f32 %v711_v20, %v710_v15  ;;  %v727_v25 = vrot.slane %v726_v21, 2  ;;  %v2549_v15 = vld [vmem:[#allocation8 + $0x94] ss:$8 sps:$4 sm:$0xff]   ;;  %v2553_v20 = vld [vmem:[#allocation8 + $0xb0] ss:$8 sps:$4 sm:$0xff]  }
 0x384   :  { %v718_v26 = vadd.f32 %v717_v22, %v716_v18  ;;  %v733_v27 = vrot.slane %v732_v23, 2  ;;  %v2550_v18 = vld [vmem:[#allocation8 + $0xa0] ss:$8 sps:$4 sm:$0xff]  }
 0x385   :  { %v713_v28 = vrot.slane %v712_v24, 1  ;;  %v728_v29 = vadd.f32 %v727_v25, %v726_v21  ;;  %v2558_v21 = vld [vmem:[#allocation8 + $0xc4] ss:$8 sps:$4 sm:$0xff]   ;;  %v2556_v22 = vld [vmem:[#allocation8 + $0xc0] ss:$8 sps:$4 sm:$0xff]  }
 0x386   :  { %v719_v30 = vrot.slane %v718_v26, 1  ;;  %v734_v31 = vadd.f32 %v733_v27, %v732_v23  ;;  %v2561_v23 = vld [vmem:[#allocation8 + $0xd4] ss:$8 sps:$4 sm:$0xff]   ;;  %v2564_v25 = vld [vmem:[#allocation8 + $0xe4] ss:$8 sps:$4 sm:$0xff]  }
 0x387   :  { %v714_v32 = vadd.f32 %v713_v28, %v712_v24  ;;  %v729_v33 = vrot.slane %v728_v29, 1  ;;  %v2559_v24 = vld [vmem:[#allocation8 + $0xd0] ss:$8 sps:$4 sm:$0xff]   ;;  %v2567_v28 = vld [vmem:[#allocation8 + $0xf4] ss:$8 sps:$4 sm:$0xff]  }
 0x388   :  { %v720_v34 = vadd.f32 %v719_v30, %v718_v26  ;;  %v735_v35 = vrot.slane %v734_v31, 1  ;;  %v2562_v26 = vld [vmem:[#allocation8 + $0xe0] ss:$8 sps:$4 sm:$0xff]   ;;  %v2565_v27 = vld [vmem:[#allocation8 + $0xf0] ss:$8 sps:$4 sm:$0xff]  }
 0x389   :  { %v721_v36 = vmul.f32 0.125, %v714_v32  ;;  %v730_v37 = vadd.f32 %v729_v33, %v728_v29  ;;  %v2570_v29 = vld [vmem:[#allocation8 + $0x104] ss:$8 sps:$4 sm:$0xff]  }
 0x38a   :  { %v722_v38 = vmul.f32 0.125, %v720_v34  ;;  %v736_v39 = vadd.f32 %v735_v35, %v734_v31 }
 0x38b   :  { %v737_v40 = vmul.f32 0.125, %v730_v37  ;;  %v739_v41 = vmul.f32 %v721_v36, %v721_v36  ;;  %v745_v50 = vsub.f32 %v702_v8, %v721_v36  ;;  %v2535_v8 = vld [vmem:[#allocation8 + $0x50] ss:$8 sps:$4 sm:$0xff]  }
 0x38c   :  { %v738_v42 = vmul.f32 0.125, %v736_v39  ;;  %v740_v43 = vmul.f32 %v722_v38, %v722_v38  ;;  %v746_v52 = vsub.f32 %v704_v11, %v722_v38  ;;  %v2543_v11 = vld [vmem:[#allocation8 + $0x74] ss:$8 sps:$4 sm:$0xff]  }
 0x38d   :  { %v741_v44 = vsub.f32 %v737_v40, %v739_v41 }
 0x38e   :  { %v742_v45 = vsub.f32 %v738_v42, %v740_v43 }
 0x38f   :  { %v743_v46 = vmax.f32 %v741_v44, 0.0 }
 0x390   :  { %v744_v47 = vmax.f32 %v742_v45, 0.0 }
 0x391   :  { %v747_v48 = vadd.f32 1e-05, %v743_v46 }
 0x392   :  { %v748_v49 = vadd.f32 1e-05, %v744_v47 }
 0x393   :  { %2636 = vrsqrt.f32 %v747_v48 }
 0x394   :  { %2638 = vrsqrt.f32 %v748_v49 }
 0x39d   :  { %v2637_v51 = vpop.eup %2636 }
 0x39e   :  { %v2639_v53 = vpop.eup %2638  ;;  %v751_v54 = vmul.f32 %v2637_v51, %v745_v50 }
 0x39f   :  { %v752_v55 = vmul.f32 %v2639_v53, %v746_v52 }
 0x3a0   :  { %vm753_vm7 = vcmp.gt.f32.partialorder %v751_v54, 0.0  ;;  %v755_v56 = vmul.f32 0.2, %v751_v54 }
 0x3a1   :  { %vm754_vm8 = vcmp.gt.f32.partialorder %v752_v55, 0.0  ;;  %v756_v57 = vmul.f32 0.2, %v752_v55 }
 0x3a2   :  { %v757_v58 = vsel %vm753_vm7, %v751_v54, %v755_v56 }
 0x3a3   :  { %v758_v59 = vsel %vm754_vm8, %v752_v55, %v756_v57  ;;  %v759_v62 = vpack.c.bf16 %v757_v58, %v757_v58 }
 0x3a4   :  { %v760_v60 = vpack.c.bf16 %v758_v59, %v758_v59 }
 0x3a6   :  { %1177 = vmatprep.mubr.bf16.mxu0 %v760_v60  ;;  %1218 = vmatprep.mubr.bf16.mxu1 %v760_v60 }
 0x3a7   :  { %1178 = vmatmul.mubr.bf16.vlgmr.msra.gmra.mrb[4].mxu0 %v759_v62  ;;  %1219 = vmatmul.mubr.bf16.vlgmr.msra.gmra.mrb[12].mxu1 %v759_v62 }
 0x3a8   :  { %1716 = vmatpush1.bf16.msra.mxu0 %v2520_v61 }
 0x3a9   :  { %1717 = vmatprep.subr.bf16.mxu0 %v2525_v63 }
 0x3ac   :  { %1718 = vmatpush1.bf16.msra.mxu0 %v2523_v0 }
 0x3ad   :  { %1719 = vmatprep.subr.bf16.mxu0 %v2528_v1 }
 0x3b0   :  { %1720 = vmatpush1.bf16.msra.mxu0 %v2526_v2 }
 0x3b1   :  { %1721 = vmatprep.subr.bf16.mxu0 %v2531_v3 }
 0x3b4   :  { %1722 = vmatpush1.bf16.msra.mxu0 %v2529_v4 }
 0x3b5   :  { %1723 = vmatprep.subr.bf16.mxu0 %v2534_v5 }
 0x3b8   :  { %1724 = vmatpush1.bf16.msra.mxu0 %v2532_v6 }
 0x3b9   :  { %1725 = vmatprep.subr.bf16.mxu0 %v2537_v7 }
 0x3bc   :  { %1726 = vmatpush1.bf16.msra.mxu0 %v2535_v8 }
 0x3bd   :  { %1727 = vmatprep.subr.bf16.mxu0 %v2540_v9 }
 0x3c0   :  { %1728 = vmatpush1.bf16.msra.mxu0 %v2538_v10 }
 0x3c1   :  { %1729 = vmatprep.subr.bf16.mxu0 %v2543_v11 }
 0x3c4   :  { %1730 = vmatpush1.bf16.msra.mxu0 %v2541_v12 }
 0x3c5   :  { %1731 = vmatprep.subr.bf16.mxu0 %v2546_v13 }
 0x3c8   :  { %1732 = vmatpush1.bf16.msra.mxu0 %v2544_v14 }
 0x3c9   :  { %1733 = vmatprep.subr.bf16.mxu0 %v2549_v15 }
 0x3cc   :  { %1734 = vmatpush1.bf16.msra.mxu0 %v2547_v16 }
 0x3cd   :  { %1735 = vmatprep.subr.bf16.mxu0 %v2552_v17 }
 0x3d0   :  { %1736 = vmatpush1.bf16.msra.mxu0 %v2550_v18 }
 0x3d1   :  { %1737 = vmatprep.subr.bf16.mxu0 %v2555_v19 }
 0x3d4   :  { %1738 = vmatpush1.bf16.msra.mxu0 %v2553_v20 }
 0x3d5   :  { %1739 = vmatprep.subr.bf16.mxu0 %v2558_v21 }
 0x3d8   :  { %1740 = vmatpush1.bf16.msra.mxu0 %v2556_v22 }
 0x3d9   :  { %1741 = vmatprep.subr.bf16.mxu0 %v2561_v23 }
 0x3dc   :  { %1742 = vmatpush1.bf16.msra.mxu0 %v2559_v24 }
 0x3dd   :  { %1743 = vmatprep.subr.bf16.mxu0 %v2564_v25 }
 0x3e0   :  { %1744 = vmatpush1.bf16.msra.mxu0 %v2562_v26 }
 0x3e1   :  { %1745 = vmatprep.subr.bf16.mxu0 %v2567_v28 }
 0x3e4   :  { %1746 = vmatpush1.bf16.msra.mxu0 %v2565_v27 }
 0x3e5   :  { %1756 = vmatprep.subr.bf16.mxu0 %v2570_v29 }
 0x47a   :  { %v2975_v30 = vpop.f32.mrb[4].mxu0  ;;  %v2977_v31 = vpop.f32.mrb[12].mxu1 }
 0x47b   :  { %v1227_v32 = vrot.slane %v2975_v30, 4  ;;  %v1255_v33 = vmul.f32 %v2975_v30, %v2975_v30  ;;  %v2982_v34 = vpop.f32.mrb[5].mxu0  ;;  %v2984_v35 = vpop.f32.mrb[13].mxu1 }
 0x47c   :  { %v1233_v36 = vrot.slane %v2982_v34, 4  ;;  %v1256_v37 = vmul.f32 %v2982_v34, %v2982_v34  ;;  %v1245_v38 = vrot.slane %v2984_v35, 4  ;;  %v1258_v39 = vmul.f32 %v2984_v35, %v2984_v35  ;;  %v1183_v40 = vpop.f32.mrb[6].mxu0  ;;  %v1224_v41 = vpop.f32.mrb[14].mxu1 }
 0x47d   :  { %v1228_v42 = vadd.f32 %v1227_v32, %v2975_v30  ;;  %v1259_v43 = vrot.slane %v1255_v33, 4  ;;  %v1184_v44 = vpop.f32.mrb[7].mxu0  ;;  %v1225_v45 = vpop.f32.mrb[15].mxu1 }
 0x47e   :  { %v1234_v46 = vadd.f32 %v1233_v36, %v2982_v34  ;;  %v1265_v47 = vrot.slane %v1256_v37, 4  ;;  %v1246_v48 = vadd.f32 %v1245_v38, %v2984_v35  ;;  %v1277_v49 = vrot.slane %v1258_v39, 4 }
 0x47f   :  { %v1229_v50 = vrot.slane %v1228_v42, 2  ;;  %v1260_v51 = vadd.f32 %v1259_v43, %v1255_v33  ;;  %v1239_v45 = vrot.slane %v2977_v31, 4 }
 0x480   :  { %v1235_v52 = vrot.slane %v1234_v46, 2  ;;  %v1266_v53 = vadd.f32 %v1265_v47, %v1256_v37  ;;  %v1247_v54 = vrot.slane %v1246_v48, 2  ;;  %v1278_v55 = vadd.f32 %v1277_v49, %v1258_v39 }
 0x481   :  { %v1230_v56 = vadd.f32 %v1229_v50, %v1228_v42  ;;  %v1261_v57 = vrot.slane %v1260_v51, 2  ;;  %v2568_v50 = vld [vmem:[#allocation8 + $0x100] ss:$8 sps:$4 sm:$0xff]  }
 0x482   :  { %v1236_v58 = vadd.f32 %v1235_v52, %v1234_v46  ;;  %v1267_v59 = vrot.slane %v1266_v53, 2  ;;  %v1248_v60 = vadd.f32 %v1247_v54, %v1246_v48  ;;  %v1279_v61 = vrot.slane %v1278_v55, 2  ;;  %v2573_v54 = vld [vmem:[#allocation8 + $0x114] ss:$8 sps:$4 sm:$0xff]  }
 0x483   :  { %v1231_v62 = vrot.slane %v1230_v56, 1  ;;  %v1262_v63 = vadd.f32 %v1261_v57, %v1260_v51  ;;  %v1257_v46 = vmul.f32 %v2977_v31, %v2977_v31 }
 0x484   :  { %v1237_v0 = vrot.slane %v1236_v58, 1  ;;  %v1268_v1 = vadd.f32 %v1267_v59, %v1266_v53  ;;  %v1249_v2 = vrot.slane %v1248_v60, 1  ;;  %v1280_v3 = vadd.f32 %v1279_v61, %v1278_v55  ;;  %v2576_v59 = vld [vmem:[#allocation8 + $0x124] ss:$8 sps:$4 sm:$0xff]  }
 0x485   :  { %v1232_v4 = vadd.f32 %v1231_v62, %v1230_v56  ;;  %v1263_v5 = vrot.slane %v1262_v63, 1  ;;  %v1271_v52 = vrot.slane %v1257_v46, 4  ;;  %v2571_v56 = vld [vmem:[#allocation8 + $0x110] ss:$8 sps:$4 sm:$0xff]  }
 0x486   :  { %v1238_v6 = vadd.f32 %v1237_v0, %v1236_v58  ;;  %v1269_v7 = vrot.slane %v1268_v1, 1  ;;  %v1250_v8 = vadd.f32 %v1249_v2, %v1248_v60  ;;  %v1281_v9 = vrot.slane %v1280_v3, 1  ;;  %v2574_v60 = vld [vmem:[#allocation8 + $0x120] ss:$8 sps:$4 sm:$0xff]   ;;  %v2577_v0 = vld [vmem:[#allocation8 + $0x130] ss:$8 sps:$4 sm:$0xff]  }
 0x487   :  { %v1251_v10 = vmul.f32 0.125, %v1232_v4  ;;  %v1264_v11 = vadd.f32 %v1263_v5, %v1262_v63  ;;  %v1272_v58 = vadd.f32 %v1271_v52, %v1257_v46  ;;  %v2579_v63 = vld [vmem:[#allocation8 + $0x134] ss:$8 sps:$4 sm:$0xff]   ;;  %v2580_v4 = vld [vmem:[#allocation8 + $0x140] ss:$8 sps:$4 sm:$0xff]  }
 0x488   :  { %v1252_v12 = vmul.f32 0.125, %v1238_v6  ;;  %v1270_v13 = vadd.f32 %v1269_v7, %v1268_v1  ;;  %v1254_v14 = vmul.f32 0.125, %v1250_v8  ;;  %v1282_v15 = vadd.f32 %v1281_v9, %v1280_v3  ;;  %v2582_v3 = vld [vmem:[#allocation8 + $0x144] ss:$8 sps:$4 sm:$0xff]   ;;  %v2585_v7 = vld [vmem:[#allocation8 + $0x154] ss:$8 sps:$4 sm:$0xff]  }
 0x489   :  { %v1283_v16 = vmul.f32 0.125, %v1264_v11  ;;  %v1287_v17 = vmul.f32 %v1251_v10, %v1251_v10  ;;  %v1299_v33 = vsub.f32 %v2975_v30, %v1251_v10  ;;  %v1273_v62 = vrot.slane %v1272_v58, 2  ;;  %v2583_v8 = vld [vmem:[#allocation8 + $0x150] ss:$8 sps:$4 sm:$0xff]   ;;  %v2588_v11 = vld [vmem:[#allocation8 + $0x164] ss:$8 sps:$4 sm:$0xff]  }
 0x48a   :  { %v1284_v18 = vmul.f32 0.125, %v1270_v13  ;;  %v1288_v19 = vmul.f32 %v1252_v12, %v1252_v12  ;;  %v1286_v21 = vmul.f32 0.125, %v1282_v15  ;;  %v1290_v22 = vmul.f32 %v1254_v14, %v1254_v14  ;;  %v2591_v15 = vld [vmem:[#allocation8 + $0x174] ss:$8 sps:$4 sm:$0xff]   ;;  %v2617_v46 = vld [vmem:[%s3075_s8] sm:$0xff]   ;;  %v2626_v52 = vld [vmem:[%s3075_s8 + $0x68] sm:$0xff]  }
 0x48b   :  { %v1291_v20 = vsub.f32 %v1283_v16, %v1287_v17  ;;  %v1300_v38 = vsub.f32 %v2982_v34, %v1252_v12  ;;  %v1302_v40 = vsub.f32 %v2984_v35, %v1254_v14  ;;  %v1240_v35 = vadd.f32 %v1239_v45, %v2977_v31  ;;  %v2586_v12 = vld [vmem:[#allocation8 + $0x160] ss:$8 sps:$4 sm:$0xff]   ;;  %v2589_v16 = vld [vmem:[#allocation8 + $0x170] ss:$8 sps:$4 sm:$0xff]  }
 0x48c   :  { %v1292_v23 = vsub.f32 %v1284_v18, %v1288_v19  ;;  %v1294_v25 = vsub.f32 %v1286_v21, %v1290_v22  ;;  %v1274_v2 = vadd.f32 %v1273_v62, %v1272_v58  ;;  %v2594_v18 = vld [vmem:[#allocation8 + $0x184] ss:$8 sps:$4 sm:$0xff]   ;;  %v2592_v19 = vld [vmem:[#allocation8 + $0x180] ss:$8 sps:$4 sm:$0xff]   ;;  %v2597_v21 = vld [vmem:[#allocation8 + $0x194] ss:$8 sps:$4 sm:$0xff]  }
 0x48d   :  { %v1295_v24 = vmax.f32 %v1291_v20, 0.0  ;;  %v1241_v57 = vrot.slane %v1240_v35, 2  ;;  %v2595_v22 = vld [vmem:[#allocation8 + $0x190] ss:$8 sps:$4 sm:$0xff]  }
 0x48e   :  { %v1296_v26 = vmax.f32 %v1292_v23, 0.0  ;;  %v1298_v28 = vmax.f32 %v1294_v25, 0.0  ;;  %v1275_v6 = vrot.slane %v1274_v2, 1  ;;  %v2598_v25 = vld [vmem:[#allocation8 + $0x1a0] ss:$8 sps:$4 sm:$0xff]  }
 0x48f   :  { %v1303_v27 = vadd.f32 1e-05, %v1295_v24  ;;  %v1242_v61 = vadd.f32 %v1241_v57, %v1240_v35  ;;  %v2600_v24 = vld [vmem:[#allocation8 + $0x1a4] ss:$8 sps:$4 sm:$0xff]   ;;  %v2631_v57 = vld [vmem:[%s3075_s8 + $0x38] sm:$0xff]  }
 0x490   :  { %v1304_v29 = vadd.f32 1e-05, %v1296_v26  ;;  %v1306_v32 = vadd.f32 1e-05, %v1298_v28  ;;  %v1276_v10 = vadd.f32 %v1275_v6, %v1274_v2  ;;  %v2603_v26 = vld [vmem:[#allocation8 + $0x1b4] ss:$8 sps:$4 sm:$0xff]  }
 0x491   :  { %2640 = vrsqrt.f32 %v1303_v27  ;;  %v1243_v1 = vrot.slane %v1242_v61, 1  ;;  %v2601_v27 = vld [vmem:[#allocation8 + $0x1b0] ss:$8 sps:$4 sm:$0xff]   ;;  %v2606_v28 = vld [vmem:[#allocation8 + $0x1c4] ss:$8 sps:$4 sm:$0xff]  }
 0x492   :  { %2642 = vrsqrt.f32 %v1304_v29  ;;  %v1285_v13 = vmul.f32 0.125, %v1276_v10  ;;  %v2604_v29 = vld [vmem:[#allocation8 + $0x1c0] ss:$8 sps:$4 sm:$0xff]  }
 0x493   :  { %2644 = vrsqrt.f32 %v1306_v32  ;;  %v1244_v5 = vadd.f32 %v1243_v1, %v1242_v61  ;;  %v2609_v32 = vld [vmem:[#allocation8 + $0x1d4] ss:$8 sps:$4 sm:$0xff]   ;;  %v2625_v35 = vld [vmem:[%s3075_s8 + $0x20] sm:$0xff]  }
 0x495   :  { %v1253_v9 = vmul.f32 0.125, %v1244_v5 }
 0x497   :  { %v1289_v14 = vmul.f32 %v1253_v9, %v1253_v9 }
 0x499   :  { %v1293_v17 = vsub.f32 %v1285_v13, %v1289_v14 }
 0x49b   :  { %v2641_v36 = vpop.eup %2640  ;;  %v1297_v20 = vmax.f32 %v1293_v17, 0.0 }
 0x49c   :  { %v1311_v37 = vmul.f32 %v2641_v36, %v1299_v33  ;;  %v2643_v39 = vpop.eup %2642  ;;  %v1301_v36 = vsub.f32 %v2977_v31, %v1253_v9  ;;  %v2616_v31 = vld [vmem:[%s3075_s8 + $0x40] sm:$0xff]  }
 0x49d   :  { %v2645_v41 = vpop.eup %2644  ;;  %v1312_v42 = vmul.f32 %v2643_v39, %v1300_v38  ;;  %v1305_v23 = vadd.f32 1e-05, %v1297_v20  ;;  %v2612_v38 = vld [vmem:[#allocation8 + $0x1e4] ss:$8 sps:$4 sm:$0xff]   ;;  %2265 = vmatprep.subr.bf16.mxu1 %v2616_v31 }
 0x49e   :  { %vm1315_vm9 = vcmp.gt.f32.partialorder %v1311_v37, 0.0  ;;  %v1319_v43 = vmul.f32 0.2, %v1311_v37  ;;  %v1314_v44 = vmul.f32 %v2645_v41, %v1302_v40  ;;  %v2610_v40 = vld [vmem:[#allocation8 + $0x1e0] ss:$8 sps:$4 sm:$0xff]   ;;  %2266 = vmatpush3.bf16.msra.mxu1 %v2617_v46 }
 0x49f   :  { %vm1316_vm10 = vcmp.gt.f32.partialorder %v1312_v42, 0.0  ;;  %v1320_v47 = vmul.f32 0.2, %v1312_v42  ;;  %2646 = vrsqrt.f32 %v1305_v23  ;;  %v2615_v41 = vld [vmem:[#allocation8 + $0x1f4] ss:$8 sps:$4 sm:$0xff]  }
 0x4a0   :  { %v1323_v30 = vsel %vm1315_vm9, %v1311_v37, %v1319_v43  ;;  %vm1318_vm11 = vcmp.gt.f32.partialorder %v1314_v44, 0.0  ;;  %v1322_v48 = vmul.f32 0.2, %v1314_v44  ;;  %v2607_v37 = vld [vmem:[#allocation8 + $0x1d0] ss:$8 sps:$4 sm:$0xff]  }
 0x4a1   :  { %v1324_v49 = vsel %vm1316_vm10, %v1312_v42, %v1320_v47  ;;  %v1327_v53 = vpack.c.bf16 %v1323_v30, %v1323_v30  ;;  %v2613_v43 = vld [vmem:[#allocation8 + $0x1f0] ss:$8 sps:$4 sm:$0xff]   ;;  %v2618_v47 = vld [vmem:[%s3075_s8 + $0x48] sm:$0xff]  }
 0x4a2   :  { %v1328_v34 = vpack.c.bf16 %v1324_v49, %v1324_v49  ;;  %v1326_v51 = vsel %vm1318_vm11, %v1314_v44, %v1322_v48  ;;  %v2619_v30 = vld [vmem:[%s3075_s8 + $0x8] sm:$0xff]   ;;  %2267 = vmatprep.subr.bf16.mxu1 %v2618_v47  ;;  %v2620_v48 = vld [vmem:[%s3075_s8 + $0x50] sm:$0xff]  }
 0x4a3   :  { %v1330_v55 = vpack.c.bf16 %v1326_v51, %v1326_v51  ;;  %2268 = vmatpush3.bf16.msra.mxu1 %v2619_v30  ;;  %v2621_v49 = vld [vmem:[%s3075_s8 + $0x10] sm:$0xff]   ;;  %v2624_v51 = vld [vmem:[%s3075_s8 + $0x60] sm:$0xff]  }
 0x4a4   :  { %1747 = vmatprep.mubr.bf16.mxu0 %v1328_v34  ;;  %2269 = vmatprep.subr.bf16.mxu1 %v2620_v48  ;;  %v2622_v34 = vld [vmem:[%s3075_s8 + $0x58] sm:$0xff]  }
 0x4a5   :  { %1748 = vmatmul.mubr.bf16.vlgmr.msra.gmra.mrb[8].mxu0 %v1327_v53  ;;  %v2627_v53 = vld [vmem:[%s3075_s8 + $0x28] sm:$0xff]  }
 0x4a6   :  { %1757 = vmatpush1.bf16.msra.mxu0 %v2568_v50  ;;  %1788 = vmatprep.mubr.bf16.mxu0 %v1330_v55  ;;  %v2623_v50 = vld [vmem:[%s3075_s8 + $0x18] sm:$0xff]   ;;  %v2629_v55 = vld [vmem:[%s3075_s8 + $0x30] sm:$0xff]  }
 0x4a7   :  { %1758 = vmatprep.subr.bf16.mxu0 %v2573_v54  ;;  %2270 = vmatpush3.bf16.msra.mxu1 %v2621_v49  ;;  %v2628_v54 = vld [vmem:[%s3075_s8 + $0x70] sm:$0xff]  }
 0x4a8   :  { %2271 = vmatprep.subr.bf16.mxu1 %v2622_v34 }
 0x4a9   :  { %v2647_v33 = vpop.eup %2646 }
 0x4aa   :  { %1759 = vmatpush1.bf16.msra.mxu0 %v2571_v56  ;;  %v1313_v39 = vmul.f32 %v2647_v33, %v1301_v36  ;;  %v2630_v56 = vld [vmem:[%s3075_s8 + $0x78] sm:$0xff]  }
 0x4ab   :  { %1760 = vmatprep.subr.bf16.mxu0 %v2576_v59  ;;  %2272 = vmatpush3.bf16.msra.mxu1 %v2623_v50  ;;  %v2234_v50 = vld [vmem:[%s3076_s9] ss:$0 sm:$0xff] }
 0x4ac   :  { %v1321_v42 = vmul.f32 0.2, %v1313_v39  ;;  %vm1317_vm12 = vcmp.gt.f32.partialorder %v1313_v39, 0.0  ;;  %2273 = vmatprep.subr.bf16.mxu1 %v2624_v51 }
 0x4ae   :  { %1761 = vmatpush1.bf16.msra.mxu0 %v2574_v60  ;;  %v1325_v44 = vsel %vm1317_vm12, %v1313_v39, %v1321_v42 }
 0x4af   :  { %1762 = vmatprep.subr.bf16.mxu0 %v2579_v63  ;;  %v1329_v45 = vpack.c.bf16 %v1325_v44, %v1325_v44  ;;  %2274 = vmatpush3.bf16.msra.mxu1 %v2625_v35 }
 0x4b0   :  { %2275 = vmatprep.subr.bf16.mxu1 %v2626_v52 }
 0x4b2   :  { %1763 = vmatpush1.bf16.msra.mxu0 %v2577_v0 }
 0x4b3   :  { %1764 = vmatprep.subr.bf16.mxu0 %v2582_v3  ;;  %2276 = vmatpush3.bf16.msra.mxu1 %v2627_v53 }
 0x4b4   :  { %2277 = vmatprep.subr.bf16.mxu1 %v2628_v54 }
 0x4b6   :  { %1765 = vmatpush1.bf16.msra.mxu0 %v2580_v4 }
 0x4b7   :  { %1766 = vmatprep.subr.bf16.mxu0 %v2585_v7  ;;  %2278 = vmatpush3.bf16.msra.mxu1 %v2629_v55 }
 0x4b8   :  { %2279 = vmatprep.subr.bf16.mxu1 %v2630_v56 }
 0x4ba   :  { %1767 = vmatpush1.bf16.msra.mxu0 %v2583_v8 }
 0x4bb   :  { %1768 = vmatprep.subr.bf16.mxu0 %v2588_v11  ;;  %2280 = vmatpush3.bf16.msra.mxu1 %v2631_v57 }
 0x4be   :  { %1769 = vmatpush1.bf16.msra.mxu0 %v2586_v12 }
 0x4bf   :  { %1770 = vmatprep.subr.bf16.mxu0 %v2591_v15 }
 0x4c2   :  { %1771 = vmatpush1.bf16.msra.mxu0 %v2589_v16 }
 0x4c3   :  { %1772 = vmatprep.subr.bf16.mxu0 %v2594_v18 }
 0x4c6   :  { %1773 = vmatpush1.bf16.msra.mxu0 %v2592_v19 }
 0x4c7   :  { %1774 = vmatprep.subr.bf16.mxu0 %v2597_v21 }
 0x4ca   :  { %1775 = vmatpush1.bf16.msra.mxu0 %v2595_v22 }
 0x4cb   :  { %1776 = vmatprep.subr.bf16.mxu0 %v2600_v24 }
 0x4ce   :  { %1777 = vmatpush1.bf16.msra.mxu0 %v2598_v25 }
 0x4cf   :  { %1778 = vmatprep.subr.bf16.mxu0 %v2603_v26 }
 0x4d2   :  { %1779 = vmatpush1.bf16.msra.mxu0 %v2601_v27 }
 0x4d3   :  { %1780 = vmatprep.subr.bf16.mxu0 %v2606_v28 }
 0x4d6   :  { %1781 = vmatpush1.bf16.msra.mxu0 %v2604_v29 }
 0x4d7   :  { %1782 = vmatprep.subr.bf16.mxu0 %v2609_v32 }
 0x4da   :  { %1783 = vmatpush1.bf16.msra.mxu0 %v2607_v37 }
 0x4db   :  { %1784 = vmatprep.subr.bf16.mxu0 %v2612_v38 }
 0x4de   :  { %1785 = vmatpush1.bf16.msra.mxu0 %v2610_v40 }
 0x4df   :  { %1786 = vmatprep.subr.bf16.mxu0 %v2615_v41 }
 0x4e2   :  { %1787 = vmatpush1.bf16.msra.mxu0 %v2613_v43 }
 0x4e5   :  { %1789 = vmatmul.mubr.bf16.vlgmr.msra.gmra.mrb[8].mxu0 %v1329_v45 }
 0x5b8   :  { %v1790_v58 = vpop.f32.mrb[8].mxu0 }
 0x5b9   :  { %v1797_v59 = vrot.slane %v1790_v58, 4  ;;  %v1811_v60 = vmul.f32 %v1790_v58, %v1790_v58  ;;  %v1792_v61 = vpop.f32.mrb[9].mxu0 }
 0x5ba   :  { %v1803_v62 = vrot.slane %v1792_v61, 4  ;;  %v1812_v63 = vmul.f32 %v1792_v61, %v1792_v61  ;;  %v1794_v0 = vpop.f32.mrb[10].mxu0 }
 0x5bb   :  { %v1798_v1 = vadd.f32 %v1797_v59, %v1790_v58  ;;  %v1813_v2 = vrot.slane %v1811_v60, 4  ;;  %v1795_v3 = vpop.f32.mrb[11].mxu0 }
 0x5bc   :  { %v1804_v4 = vadd.f32 %v1803_v62, %v1792_v61  ;;  %v1819_v5 = vrot.slane %v1812_v63, 4 }
 0x5bd   :  { %v1799_v6 = vrot.slane %v1798_v1, 2  ;;  %v1814_v7 = vadd.f32 %v1813_v2, %v1811_v60 }
 0x5be   :  { %v1805_v8 = vrot.slane %v1804_v4, 2  ;;  %v1820_v9 = vadd.f32 %v1819_v5, %v1812_v63 }
 0x5bf   :  { %v1800_v10 = vadd.f32 %v1799_v6, %v1798_v1  ;;  %v1815_v11 = vrot.slane %v1814_v7, 2 }
 0x5c0   :  { %v1806_v12 = vadd.f32 %v1805_v8, %v1804_v4  ;;  %v1821_v13 = vrot.slane %v1820_v9, 2 }
 0x5c1   :  { %v1801_v14 = vrot.slane %v1800_v10, 1  ;;  %v1816_v15 = vadd.f32 %v1815_v11, %v1814_v7 }
 0x5c2   :  { %v1807_v16 = vrot.slane %v1806_v12, 1  ;;  %v1822_v17 = vadd.f32 %v1821_v13, %v1820_v9 }
 0x5c3   :  { %v1802_v18 = vadd.f32 %v1801_v14, %v1800_v10  ;;  %v1817_v19 = vrot.slane %v1816_v15, 1 }
 0x5c4   :  { %v1808_v20 = vadd.f32 %v1807_v16, %v1806_v12  ;;  %v1823_v21 = vrot.slane %v1822_v17, 1 }
 0x5c5   :  { %v1809_v22 = vmul.f32 0.125, %v1802_v18  ;;  %v1818_v23 = vadd.f32 %v1817_v19, %v1816_v15 }
 0x5c6   :  { %v1810_v24 = vmul.f32 0.125, %v1808_v20  ;;  %v1824_v25 = vadd.f32 %v1823_v21, %v1822_v17 }
 0x5c7   :  { %v1825_v26 = vmul.f32 0.125, %v1818_v23  ;;  %v1827_v27 = vmul.f32 %v1809_v22, %v1809_v22  ;;  %v1833_v40 = vsub.f32 %v1790_v58, %v1809_v22 }
 0x5c8   :  { %v1826_v28 = vmul.f32 0.125, %v1824_v25  ;;  %v1828_v29 = vmul.f32 %v1810_v24, %v1810_v24  ;;  %v1834_v42 = vsub.f32 %v1792_v61, %v1810_v24 }
 0x5c9   :  { %v1829_v32 = vsub.f32 %v1825_v26, %v1827_v27 }
 0x5ca   :  { %v1830_v33 = vsub.f32 %v1826_v28, %v1828_v29 }
 0x5cb   :  { %v1831_v36 = vmax.f32 %v1829_v32, 0.0 }
 0x5cc   :  { %v1832_v37 = vmax.f32 %v1830_v33, 0.0 }
 0x5cd   :  { %v1835_v38 = vadd.f32 1e-05, %v1831_v36 }
 0x5ce   :  { %v1836_v39 = vadd.f32 1e-05, %v1832_v37 }
 0x5cf   :  { %2648 = vrsqrt.f32 %v1835_v38 }
 0x5d0   :  { %2650 = vrsqrt.f32 %v1836_v39 }
 0x5d9   :  { %v2649_v41 = vpop.eup %2648 }
 0x5da   :  { %v2651_v43 = vpop.eup %2650  ;;  %v1839_v44 = vmul.f32 %v2649_v41, %v1833_v40 }
 0x5db   :  { %v1840_v45 = vmul.f32 %v2651_v43, %v1834_v42 }
 0x5dc   :  { %vm1841_vm13 = vcmp.gt.f32.partialorder %v1839_v44, 0.0  ;;  %v1843_v31 = vmul.f32 0.2, %v1839_v44 }
 0x5dd   :  { %vm1842_vm14 = vcmp.gt.f32.partialorder %v1840_v45, 0.0  ;;  %v1844_v46 = vmul.f32 0.2, %v1840_v45 }
 0x5de   :  { %v1845_v47 = vsel %vm1841_vm13, %v1839_v44, %v1843_v31 }
 0x5df   :  { %v1846_v30 = vsel %vm1842_vm14, %v1840_v45, %v1844_v46  ;;  %v1847_v49 = vpack.c.bf16 %v1845_v47, %v1845_v47 }
 0x5e0   :  { %v1848_v48 = vpack.c.bf16 %v1846_v30, %v1846_v30 }
 0x5e2   :  { %2016 = vmatprep.mubr.bf16.mxu1 %v1848_v48 }
 0x5e3   :  { %2017 = vmatmul.mubr.bf16.vlgmr.msra.gmra.mrb[16].mxu1 %v1847_v49 }
 0x6b6   :  { %v2281_v34 = vpop.f32.mrb[16].mxu1 }
 0x6b7   :  { %v2282_v51 = vpop.f32.mrb[17].mxu1 }
 0x6b8   :  { %v2283_v35 = vadd.f32 %v2282_v51, %v2281_v34  ;;  %v2284_v52 = vpop.f32.mrb[18].mxu1 }
 0x6b9   :  { %v2285_v53 = vpop.f32.mrb[19].mxu1 }
 0x6ba   :  { %v2019_v54 = vadd.f32 %v2283_v35, %v2234_v50 }
 0x6bc   :  { %2652 = vtanh.f32 %v2019_v54 }
 0x6c6   :  { %v2653_v55 = vpop.eup %2652 }
 0x6c7   :  { %2025 = vst.msk [vmem:[#allocation10] sm:$0xff] %vm239_vm1, %v2653_v55 }
 0x6c8   :  { %2753 = shalt.err (!%p2750_p8)
}
 0x6c9   :  { %s2754_s11 = scalar_lea.hbm %s3077_s10, 128 }
 0x6ca   :  { %p2755_p9 = scmp.ne.s32.totalorder %s3077_s10, %s2754_s11  ;;  %p2758_p10 = scmp.lt.u32.totalorder %s2754_s11, %s3077_s10 }
 0x6cc   :  { %p2760_p11 = pnand %p2758_p10, %p2755_p9 }
 0x6ce   :  { %2763 = shalt.err (!%p2760_p11)
}
 0x6cf   :  { %2035 = dma.vmem_to_hbm [thread:$0]  %s2033_s23, 128, %s3077_s10, [#allocation4]  }
 0x6d0   :  { %2770 = dma.done.wait [#allocation4], 128  }
 0x6d1   :  { %2771 = vsyncadd [#allocation4], 4294967168 }
 0x6d2   :  { %2039 = vsyncpa [#allocation3], 1 }
 0x6d3   :  { %2040 = vsyncpa [#allocation6], 1 }
 0x6d4   :  { %2041 = vsyncpa [#allocation9], 1 }
 0x6d5   :  { %2042 = vsyncpa [#allocation4], 1 }

</bundles_post_ra>
